<compile_context>
chip_gen: v7x
topology: tpu7x:2x2x1
jax: 0.10.0
libtpu: 0.0.40
codegen_flags: <defaults>
</compile_context>

<pallas_src>
import functools
import math

import numpy as np
import jax
import jax.numpy as jnp
from jax.experimental import pallas as pl
from jax.experimental.pallas import tpu as pltpu

# module defaults (tails=None, num_blocks=2, residual blocks, no BN, dropout=0)
NUM_BINS = 10
MIN_BIN_WIDTH = 1e-3      # utils.splines.DEFAULT_MIN_BIN_WIDTH
MIN_BIN_HEIGHT = 1e-3     # utils.splines.DEFAULT_MIN_BIN_HEIGHT
MIN_DERIVATIVE = 1e-3     # utils.splines.DEFAULT_MIN_DERIVATIVE
PARAM_MULT = 3 * NUM_BINS + 1   # _output_dim_multiplier() for tails=None
CTX_MID = 32                    # hidden width of the context MLP [C, 32, H]


# ------------------------------ fused kernel ---------------------------------
def _fused_flow_kernel(
    x_ref, ctx_ref,
    w0_ref, b0_ref, wctx_ref, bctx_ref, wc2_ref, bc2_ref,
    wa1_ref, ba1_ref, wa2_ref, ba2_ref,
    wb1_ref, bb1_ref, wb2_ref, bb2_ref,
    wf_ref, bf_ref,
    segsum_bcast_ref, cumsum_ref, seg_bcast_ref, seg_reduce_ref, rowc_ref,
    out_ref, ld_ref,
    *, features, num_bins, hidden, ctx_mid,
):
    F = features
    nb = num_bins
    npb = nb + 1
    NW = F * nb
    ND = F * npb
    H = hidden
    CM = ctx_mid

    def mm(a, b):
        return jnp.dot(a, b, preferred_element_type=jnp.float32)

    x = x_ref[...]        # [TB, F]
    ctx = ctx_ref[...]    # [TB, C]

    # ----------------- conditional MADE (masks pre-folded into weights) ------
    h = mm(x, w0_ref[...]) + b0_ref[...]
    # single fused matmul for every layer that consumes `ctx`
    cmix = mm(ctx, wctx_ref[...]) + bctx_ref[...]            # [TB, CM + 2H]
    h = h + mm(jnp.maximum(cmix[:, :CM], 0.0), wc2_ref[...]) + bc2_ref[...]
    gate_a = cmix[:, CM:CM + H]
    gate_b = cmix[:, CM + H:CM + 2 * H]

    def residual_block(h, w1, b1, w2, b2, gate):
        t = jnp.maximum(h, 0.0)
        t = mm(t, w1) + b1
        t = jnp.maximum(t, 0.0)
        t = mm(t, w2) + b2
        # F.glu(cat(t, context_layer(ctx)), dim=1) == t * sigmoid(gate)
        return h + t * (1.0 / (1.0 + jnp.exp(-gate)))

    h = residual_block(h, wa1_ref[...], ba1_ref[...], wa2_ref[...], ba2_ref[...], gate_a)
    h = residual_block(h, wb1_ref[...], bb1_ref[...], wb2_ref[...], bb2_ref[...], gate_b)

    # final masked linear, param-type-major column layout, zero-padded lanes
    ar = mm(h, wf_ref[...]) + bf_ref[...]                    # [TB, OUT_PAD]

    # ----------------- rational-quadratic spline (tails=None) ----------------
    uw = ar[:, 0:NW]                 # unnormalized widths   [TB, F*nb]
    uh = ar[:, NW:2 * NW]            # unnormalized heights  [TB, F*nb]
    ud = ar[:, 2 * NW:2 * NW + ND]   # unnormalized derivs   [TB, F*(nb+1)]

    seg_ones = segsum_bcast_ref[...]   # [NW, NW] block-diag ones (segment sums)
    cum_mat = cumsum_ref[...]          # [NW, ND] segment-triangular * (1 - min*nb)
    seg_bcast = seg_bcast_ref[...]     # [F, ND]  repeat per-feature value over knots
    seg_reduce = seg_reduce_ref[...]   # [ND, F]  per-feature knot-lane reduction
    rowc = rowc_ref[...]               # [3, ND]  offset / end-knot mask / knot pos
    offset = rowc[0:1, :]
    endmask = rowc[1:2, :]
    pos = rowc[2:3, :]

    def knots(u):
        # Segmented softmax: subtracting the row-global max is mathematically
        # identical to the per-segment max (constant shift within a segment).
        m = jnp.max(u, axis=-1, keepdims=True)
        e = jnp.exp(u - m)
        denom = mm(e, seg_ones)                  # per-segment sum, broadcast in-segment
        s = e * pl.reciprocal(denom)             # softmax
        # cumsum + min-bin affine + prepended-zero knot as ONE MXU matmul
        c = mm(s, cum_mat) + offset
        return c * (1.0 - endmask) + endmask     # force right knot to exactly 1.0

    cumw = knots(uw)                             # [TB, ND] cumulative widths
    cumh = knots(uh)                             # [TB, ND] cumulative heights
    deriv = MIN_DERIVATIVE + (jnp.maximum(ud, 0.0)
                              + jnp.log(1.0 + jnp.exp(-jnp.abs(ud))))  # softplus

    # searchsorted over every feature segment (MXU + VPU, no XLU gathers)
    xb = mm(x, seg_bcast)                                    # x repeated per knot
    ge = (xb >= cumw + endmask * 1e-6).astype(jnp.float32)
    bins = mm(ge, seg_reduce) - 1.0                          # [TB, F] bin index
    binb = mm(bins, seg_bcast)                               # bin repeated per knot
    oh = (pos == binb).astype(jnp.float32)                   # one-hot at bin
    oh1 = (pos == binb + 1.0).astype(jnp.float32)            # one-hot at bin + 1
    ohd = oh1 - oh

    def gather(a, o):                                        # segment gather -> MXU
        return mm(a * o, seg_reduce)                         # [TB, F]

    in_cw = gather(cumw, oh)        # left knot
    in_bw = gather(cumw, ohd)       # bin width  = cumw[bin+1] - cumw[bin]
    in_ch = gather(cumh, oh)        # bottom knot
    in_bh = gather(cumh, ohd)       # bin height = cumh[bin+1] - cumh[bin]
    in_d = gather(deriv, oh)        # derivative at left knot
    in_d1 = gather(deriv, oh1)      # derivative at right knot

    rbw = pl.reciprocal(in_bw)
    in_delta = in_bh * rbw          # heights/widths gathered at the bin
    theta = (x - in_cw) * rbw
    th1m = theta * (1.0 - theta)
    numerator = in_bh * (in_delta * theta * theta + in_d * th1m)
    denominator = in_delta + (in_d + in_d1 - 2.0 * in_delta) * th1m
    outputs = in_ch + numerator * pl.reciprocal(denominator)
    dnum = (in_delta * in_delta) * (in_d1 * theta * theta
                                    + 2.0 * in_delta * th1m
                                    + in_d * (1.0 - theta) * (1.0 - theta))
    logabsdet = jnp.log(dnum) - 2.0 * jnp.log(denominator)

    out_ref[...] = outputs                                        # [TB, F]
    ld_ref[...] = jnp.sum(logabsdet, axis=-1, keepdims=True)      # sum_except_batch


# ------------------------- static spline constant matrices --------------------
def _spline_constants(features, num_bins):
    assert MIN_BIN_WIDTH == MIN_BIN_HEIGHT
    F, nb = features, num_bins
    npb = nb + 1
    NW, ND = F * nb, F * npb
    seg_ones = np.zeros((NW, NW), np.float32)
    cum = np.zeros((NW, ND), np.float32)
    seg_bcast = np.zeros((F, ND), np.float32)
    seg_reduce = np.zeros((ND, F), np.float32)
    rowc = np.zeros((3, ND), np.float32)
    scale = 1.0 - MIN_BIN_WIDTH * nb
    for f in range(F):
        seg_ones[f * nb:(f + 1) * nb, f * nb:(f + 1) * nb] = 1.0
        seg_bcast[f, f * npb:(f + 1) * npb] = 1.0
        seg_reduce[f * npb:(f + 1) * npb, f] = 1.0
        for j in range(npb):
            c = f * npb + j
            rowc[0, c] = j * MIN_BIN_WIDTH        # min-bin affine offset
            rowc[1, c] = 1.0 if j == nb else 0.0  # right-endpoint mask
            rowc[2, c] = float(j)                 # knot position within segment
            for k in range(nb):
                if k < j:
                    cum[f * nb + k, c] = scale
    return tuple(jnp.asarray(a) for a in (seg_ones, cum, seg_bcast, seg_reduce, rowc))


# ----------------------- logical (torch-layout) parameters --------------------
def build_params(key, features, hidden, context_features, ctx_mid=CTX_MID):
    F, H, C, M = features, hidden, context_features, PARAM_MULT

    # MADE degrees / masks (permute_mask=False, random_mask=False)
    deg_in = np.arange(1, F + 1)
    max_, min_ = max(1, F - 1), min(1, F - 1)
    deg_h = np.arange(H) % max_ + min_
    mask0 = (deg_h[:, None] >= deg_in[None, :]).astype(np.float32)     # [H, F]
    mask_hh = (deg_h[:, None] >= deg_h[None, :]).astype(np.float32)    # [H, H]
    deg_out = np.repeat(deg_in, M)                                     # tile(deg_in, M)
    mask_f = (deg_out[:, None] > deg_h[None, :]).astype(np.float32)    # [F*M, H]

    keys = iter(jax.random.split(key, 32))

    def make(shape, scale=None):
        if scale is None:
            scale = 1.0 / math.sqrt(shape[-1])   # torch layout [out, in]
        return scale * jax.random.normal(next(keys), shape, jnp.float32)

    id_bias = math.log(math.exp(1.0 - MIN_DERIVATIVE) - 1.0)
    return dict(
        mask0=jnp.asarray(mask0), mask_hh=jnp.asarray(mask_hh), mask_f=jnp.asarray(mask_f),
        W0=make((H, F)), b0=make((H,), 0.1),
        Wc1=make((ctx_mid, C)), bc1=make((ctx_mid,), 0.1),
        Wc2=make((H, ctx_mid)), bc2=make((H,), 0.1),
        Wa1=make((H, H)), ba1=make((H,), 0.1),
        Wa2=make((H, H), 1e-3), ba2=make((H,), 1e-3),
        Wag=make((H, C)), bag=make((H,), 0.1),
        Wb1=make((H, H)), bb1=make((H,), 0.1),
        Wb2=make((H, H), 1e-3), bb2=make((H,), 1e-3),
        Wbg=make((H, C)), bbg=make((H,), 0.1),
        # init_identity-style bias plus a small perturbation so the full spline
        # pipeline is numerically exercised
        Wf=make((F * M, H), 1e-2),
        bf=id_bias + make((F * M,), 1e-2),
    )


# ------------------- kernel-layout parameter preparation ----------------------
def prepare_kernel_params(p, features, hidden, context_features,
                          num_bins=NUM_BINS, ctx_mid=CTX_MID):
    F, H, nb = features, hidden, num_bins
    M = 3 * nb + 1
    npb = nb + 1
    NW, ND = F * nb, F * npb
    out_dim = 2 * NW + ND
    out_pad = pl.cdiv(out_dim, 128) * 128

    def T(w, mask=None):
        wm = w * mask if mask is not None else w
        return jnp.asarray(wm.T)                 # [in, out] for `h @ W`

    def B2(b):
        return jnp.asarray(b).reshape(1, -1)     # bias as [1, out]

    # merge every matmul whose input is `ctx` into one wide weight
    Wctx = jnp.concatenate([T(p["Wc1"]), T(p["Wag"]), T(p["Wbg"])], axis=1)
    bctx = jnp.concatenate([B2(p["bc1"]), B2(p["bag"]), B2(p["bbg"])], axis=1)

    # final masked linear: mask, permute feature-major -> param-type-major, pad
    WfT = T(p["Wf"], p["mask_f"])                # [H, F*M]
    bf = B2(p["bf"])                             # [1, F*M]
    perm = []
    for f in range(F):                           # widths block
        perm += [f * M + k for k in range(nb)]
    for f in range(F):                           # heights block
        perm += [f * M + nb + k for k in range(nb)]
    for f in range(F):                           # derivatives block
        perm += [f * M + 2 * nb + k for k in range(npb)]
    perm = jnp.asarray(perm, jnp.int32)
    Wf_perm = WfT[:, perm]
    bf_perm = bf[:, perm]
    pad = out_pad - out_dim
    if pad:
        Wf_perm = jnp.concatenate([Wf_perm, jnp.zeros((H, pad), jnp.float32)], axis=1)
        bf_perm = jnp.concatenate([bf_perm, jnp.zeros((1, pad), jnp.float32)], axis=1)

    weights = (T(p["W0"], p["mask0"]), B2(p["b0"]),
               Wctx, bctx,
               T(p["Wc2"]), B2(p["bc2"]),
               T(p["Wa1"], p["mask_hh"]), B2(p["ba1"]),
               T(p["Wa2"], p["mask_hh"]), B2(p["ba2"]),
               T(p["Wb1"], p["mask_hh"]), B2(p["bb1"]),
               T(p["Wb2"], p["mask_hh"]), B2(p["bb2"]),
               Wf_perm, bf_perm)
    consts = _spline_constants(F, nb)
    return weights, consts


# ------------------------------ wrapper ----------------------------------------
def flow_forward(x, ctx, weights, consts, *, features, hidden,
                 ctx_mid=CTX_MID, num_bins=NUM_BINS):
    """MaskedPiecewiseRationalQuadraticAutoregressive.forward -> (outputs, logabsdet)."""
    B, F = x.shape
    C = ctx.shape[1]
    TB = B if B <= 128 else 128            # batch tile (tiny VMEM footprint, v7x-safe)
    assert B % TB == 0
    grid = (B // TB,)

    def tiled(shape):
        return pl.BlockSpec(shape, lambda i: (i, 0))

    def whole(a):
        zeros = (0,) * a.ndim
        return pl.BlockSpec(a.shape, lambda i, z=zeros: z)   # resident weight

    in_specs = ([tiled((TB, F)), tiled((TB, C))]
                + [whole(w) for w in weights]
                + [whole(c) for c in consts])
    out_specs = (tiled((TB, F)), tiled((TB, 1)))

    kernel = functools.partial(_fused_flow_kernel, features=F, num_bins=num_bins,
                               hidden=hidden, ctx_mid=ctx_mid)
    out, ld = pl.pallas_call(
        kernel,
        grid=grid,
        in_specs=in_specs,
        out_specs=out_specs,
        out_shape=(jax.ShapeDtypeStruct((B, F), jnp.float32),
                   jax.ShapeDtypeStruct((B, 1), jnp.float32)),
        compiler_params=pltpu.CompilerParams(dimension_semantics=("parallel",)),
    )(x, ctx, *weights, *consts)
    return out, ld[:, 0]


# --------------------- pure-JAX reference (faithful torch math) ----------------
def reference_forward(x, ctx, p, features, num_bins):
    relu = lambda v: jnp.maximum(v, 0.0)
    sig = lambda v: 1.0 / (1.0 + jnp.exp(-v))

    def lin(h, W, b, mask=None):
        Wm = W * mask if mask is not None else W
        return h @ Wm.T + b

    h = lin(x, p["W0"], p["b0"], p["mask0"])
    c = relu(lin(ctx, p["Wc1"], p["bc1"]))
    h = h + lin(c, p["Wc2"], p["bc2"])

    def block(h, W1, b1, W2, b2, Wg, bg):
        t = relu(h)
        t = lin(t, W1, b1, p["mask_hh"])
        t = relu(t)
        t = lin(t, W2, b2, p["mask_hh"])
        g = lin(ctx, Wg, bg)
        return h + t * sig(g)

    h = block(h, p["Wa1"], p["ba1"], p["Wa2"], p["ba2"], p["Wag"], p["bag"])
    h = block(h, p["Wb1"], p["bb1"], p["Wb2"], p["bb2"], p["Wbg"], p["bbg"])
    ar = lin(h, p["Wf"], p["bf"], p["mask_f"])           # [B, F*M]

    B, F = x.shape
    nb = num_bins
    tp = ar.reshape(B, F, 3 * nb + 1)
    uw, uh, ud = tp[..., :nb], tp[..., nb:2 * nb], tp[..., 2 * nb:]

    def knots(u, mn):
        s = jax.nn.softmax(u, axis=-1)
        s = mn + (1.0 - mn * nb) * s
        cs = jnp.cumsum(s, axis=-1)
        cs = jnp.pad(cs, ((0, 0), (0, 0), (1, 0)))
        cs = cs.at[..., -1].set(1.0)
        sizes = cs[..., 1:] - cs[..., :-1]
        return cs, sizes

    cw, widths = knots(uw, MIN_BIN_WIDTH)
    ch, heights = knots(uh, MIN_BIN_HEIGHT)
    deriv = MIN_DERIVATIVE + jax.nn.softplus(ud)

    locs = cw.at[..., -1].add(1e-6)
    bin_idx = jnp.sum((x[..., None] >= locs).astype(jnp.int32),
                      axis=-1, keepdims=True) - 1

    def take(a):
        return jnp.take_along_axis(a, bin_idx, axis=-1)[..., 0]

    in_cw, in_bw = take(cw), take(widths)
    in_ch, in_bh = take(ch), take(heights)
    in_delta = take(heights / widths)
    in_d, in_d1 = take(deriv), take(deriv[..., 1:])

    theta = (x - in_cw) / in_bw
    th1m = theta * (1.0 - theta)
    num = in_bh * (in_delta * theta ** 2 + in_d * th1m)
    den = in_delta + (in_d + in_d1 - 2.0 * in_delta) * th1m
    out = in_ch + num / den
    dnum = in_delta ** 2 * (in_d1 * theta ** 2 + 2.0 * in_delta * th1m
                            + in_d * (1.0 - theta) ** 2)
    ld = jnp.log(dnum) - 2.0 * jnp.log(den)
    return out, jnp.sum(ld, axis=-1)


# ------------------------------------ main -------------------------------------
if __name__ == "__main__":
    B, F, H, C = 8, 4, 32, 8   # batch, features, hidden_features, context_features

    key = jax.random.PRNGKey(0)
    kx, kc, kp = jax.random.split(key, 3)
    # tails=None => rational_quadratic_spline requires inputs in [0, 1]
    x = jax.random.uniform(kx, (B, F), jnp.float32, minval=0.05, maxval=0.95)
    ctx = jax.random.normal(kc, (B, C), jnp.float32)

    logical_params = build_params(kp, F, H, C)
    weights, consts = prepare_kernel_params(logical_params, F, H, C)

    outputs, logabsdet = flow_forward(x, ctx, weights, consts, features=F, hidden=H)
    jax.block_until_ready((outputs, logabsdet))

    with jax.default_matmul_precision("float32"):
        ref_out, ref_ld = reference_forward(x, ctx, logical_params, F, NUM_BINS)

    assert outputs.shape == (B, F) and logabsdet.shape == (B,)
    assert jnp.allclose(outputs, ref_out, atol=2e-3, rtol=2e-3), \
        float(jnp.max(jnp.abs(outputs - ref_out)))
    assert jnp.allclose(logabsdet, ref_ld, atol=2e-3, rtol=2e-3), \
        float(jnp.max(jnp.abs(logabsdet - ref_ld)))

    print("KERNEL_OK")
</pallas_src>

<mosaic_0001>
module attributes {stable_mosaic.version = 11 : i64} {
  func.func @_fused_flow_kernel(%arg0: i32, %arg1: memref<8x4xf32, #tpu.memory_space<vmem>>, %arg2: memref<8x8xf32, #tpu.memory_space<vmem>>, %arg3: memref<4x32xf32, #tpu.memory_space<vmem>>, %arg4: memref<1x32xf32, #tpu.memory_space<vmem>>, %arg5: memref<8x96xf32, #tpu.memory_space<vmem>>, %arg6: memref<1x96xf32, #tpu.memory_space<vmem>>, %arg7: memref<32x32xf32, #tpu.memory_space<vmem>>, %arg8: memref<1x32xf32, #tpu.memory_space<vmem>>, %arg9: memref<32x32xf32, #tpu.memory_space<vmem>>, %arg10: memref<1x32xf32, #tpu.memory_space<vmem>>, %arg11: memref<32x32xf32, #tpu.memory_space<vmem>>, %arg12: memref<1x32xf32, #tpu.memory_space<vmem>>, %arg13: memref<32x32xf32, #tpu.memory_space<vmem>>, %arg14: memref<1x32xf32, #tpu.memory_space<vmem>>, %arg15: memref<32x32xf32, #tpu.memory_space<vmem>>, %arg16: memref<1x32xf32, #tpu.memory_space<vmem>>, %arg17: memref<32x128xf32, #tpu.memory_space<vmem>>, %arg18: memref<1x128xf32, #tpu.memory_space<vmem>>, %arg19: memref<40x40xf32, #tpu.memory_space<vmem>>, %arg20: memref<40x44xf32, #tpu.memory_space<vmem>>, %arg21: memref<4x44xf32, #tpu.memory_space<vmem>>, %arg22: memref<44x4xf32, #tpu.memory_space<vmem>>, %arg23: memref<3x44xf32, #tpu.memory_space<vmem>>, %arg24: memref<8x4xf32, #tpu.memory_space<vmem>>, %arg25: memref<8x1xf32, #tpu.memory_space<vmem>>) attributes {dimension_semantics = [#tpu.dimension_semantics<parallel>], iteration_bounds = array<i64: 1>, scalar_prefetch = 0 : i64, scratch_operands = 0 : i64, tpu.core_type = #tpu.core_type<tc>, window_params = [{transform_indices = @transform_0, window_bounds = array<i64: 8, 4>}, {transform_indices = @transform_1, window_bounds = array<i64: 8, 8>}, {pipeline_mode = #tpu.pipeline_mode<synchronous>, transform_indices = @transform_2, window_bounds = array<i64: 4, 32>}, {pipeline_mode = #tpu.pipeline_mode<synchronous>, transform_indices = @transform_3, window_bounds = array<i64: 1, 32>}, {pipeline_mode = #tpu.pipeline_mode<synchronous>, transform_indices = @transform_4, window_bounds = array<i64: 8, 96>}, {pipeline_mode = #tpu.pipeline_mode<synchronous>, transform_indices = @transform_5, window_bounds = array<i64: 1, 96>}, {pipeline_mode = #tpu.pipeline_mode<synchronous>, transform_indices = @transform_6, window_bounds = array<i64: 32, 32>}, {pipeline_mode = #tpu.pipeline_mode<synchronous>, transform_indices = @transform_7, window_bounds = array<i64: 1, 32>}, {pipeline_mode = #tpu.pipeline_mode<synchronous>, transform_indices = @transform_8, window_bounds = array<i64: 32, 32>}, {pipeline_mode = #tpu.pipeline_mode<synchronous>, transform_indices = @transform_9, window_bounds = array<i64: 1, 32>}, {pipeline_mode = #tpu.pipeline_mode<synchronous>, transform_indices = @transform_10, window_bounds = array<i64: 32, 32>}, {pipeline_mode = #tpu.pipeline_mode<synchronous>, transform_indices = @transform_11, window_bounds = array<i64: 1, 32>}, {pipeline_mode = #tpu.pipeline_mode<synchronous>, transform_indices = @transform_12, window_bounds = array<i64: 32, 32>}, {pipeline_mode = #tpu.pipeline_mode<synchronous>, transform_indices = @transform_13, window_bounds = array<i64: 1, 32>}, {pipeline_mode = #tpu.pipeline_mode<synchronous>, transform_indices = @transform_14, window_bounds = array<i64: 32, 32>}, {pipeline_mode = #tpu.pipeline_mode<synchronous>, transform_indices = @transform_15, window_bounds = array<i64: 1, 32>}, {pipeline_mode = #tpu.pipeline_mode<synchronous>, transform_indices = @transform_16, window_bounds = array<i64: 32, 128>}, {pipeline_mode = #tpu.pipeline_mode<synchronous>, transform_indices = @transform_17, window_bounds = array<i64: 1, 128>}, {pipeline_mode = #tpu.pipeline_mode<synchronous>, transform_indices = @transform_18, window_bounds = array<i64: 40, 40>}, {pipeline_mode = #tpu.pipeline_mode<synchronous>, transform_indices = @transform_19, window_bounds = array<i64: 40, 44>}, {pipeline_mode = #tpu.pipeline_mode<synchronous>, transform_indices = @transform_20, window_bounds = array<i64: 4, 44>}, {pipeline_mode = #tpu.pipeline_mode<synchronous>, transform_indices = @transform_21, window_bounds = array<i64: 44, 4>}, {pipeline_mode = #tpu.pipeline_mode<synchronous>, transform_indices = @transform_22, window_bounds = array<i64: 3, 44>}, {transform_indices = @transform_23, window_bounds = array<i64: 8, 4>}, {transform_indices = @transform_24, window_bounds = array<i64: 8, 1>}]} {
    %c0 = arith.constant 0 : index
    %c0_0 = arith.constant 0 : index
    %0 = vector.load %arg1[%c0, %c0_0] : memref<8x4xf32, #tpu.memory_space<vmem>>, vector<8x4xf32>
    %c0_1 = arith.constant 0 : index
    %c0_2 = arith.constant 0 : index
    %1 = vector.load %arg2[%c0_1, %c0_2] : memref<8x8xf32, #tpu.memory_space<vmem>>, vector<8x8xf32>
    %c0_3 = arith.constant 0 : index
    %c0_4 = arith.constant 0 : index
    %2 = vector.load %arg3[%c0_3, %c0_4] : memref<4x32xf32, #tpu.memory_space<vmem>>, vector<4x32xf32>
    %cst = arith.constant dense<0.000000e+00> : vector<8x32xf32>
    %3 = tpu.matmul %0, %2, %cst {dimension_numbers = #tpu.dot_dimension_numbers<[1], [0], [0], [1], [0, 0, 1, 1], [], []>} : vector<8x4xf32>, vector<4x32xf32>, vector<8x32xf32> -> vector<8x32xf32>
    %c0_5 = arith.constant 0 : index
    %c0_6 = arith.constant 0 : index
    %4 = vector.load %arg4[%c0_5, %c0_6] : memref<1x32xf32, #tpu.memory_space<vmem>>, vector<1x32xf32>
    %5 = vector.broadcast %4 : vector<1x32xf32> to vector<8x32xf32>
    %6 = arith.addf %3, %5 : vector<8x32xf32>
    %c0_7 = arith.constant 0 : index
    %c0_8 = arith.constant 0 : index
    %7 = vector.load %arg5[%c0_7, %c0_8] : memref<8x96xf32, #tpu.memory_space<vmem>>, vector<8x96xf32>
    %cst_9 = arith.constant dense<0.000000e+00> : vector<8x96xf32>
    %8 = tpu.matmul %1, %7, %cst_9 {dimension_numbers = #tpu.dot_dimension_numbers<[1], [0], [0], [1], [0, 0, 1, 1], [], []>} : vector<8x8xf32>, vector<8x96xf32>, vector<8x96xf32> -> vector<8x96xf32>
    %c0_10 = arith.constant 0 : index
    %c0_11 = arith.constant 0 : index
    %9 = vector.load %arg6[%c0_10, %c0_11] : memref<1x96xf32, #tpu.memory_space<vmem>>, vector<1x96xf32>
    %10 = vector.broadcast %9 : vector<1x96xf32> to vector<8x96xf32>
    %11 = arith.addf %8, %10 : vector<8x96xf32>
    %12 = vector.extract_strided_slice %11 {offsets = [0, 0], sizes = [8, 32], strides = [1, 1]} : vector<8x96xf32> to vector<8x32xf32>
    %cst_12 = arith.constant 0.000000e+00 : f32
    %13 = vector.broadcast %cst_12 : f32 to vector<8x32xf32>
    %14 = arith.maximumf %12, %13 : vector<8x32xf32>
    %c0_13 = arith.constant 0 : index
    %c0_14 = arith.constant 0 : index
    %15 = vector.load %arg7[%c0_13, %c0_14] : memref<32x32xf32, #tpu.memory_space<vmem>>, vector<32x32xf32>
    %cst_15 = arith.constant dense<0.000000e+00> : vector<8x32xf32>
    %16 = tpu.matmul %14, %15, %cst_15 {dimension_numbers = #tpu.dot_dimension_numbers<[1], [0], [0], [1], [0, 0, 1, 1], [], []>} : vector<8x32xf32>, vector<32x32xf32>, vector<8x32xf32> -> vector<8x32xf32>
    %17 = arith.addf %6, %16 : vector<8x32xf32>
    %c0_16 = arith.constant 0 : index
    %c0_17 = arith.constant 0 : index
    %18 = vector.load %arg8[%c0_16, %c0_17] : memref<1x32xf32, #tpu.memory_space<vmem>>, vector<1x32xf32>
    %19 = vector.broadcast %18 : vector<1x32xf32> to vector<8x32xf32>
    %20 = arith.addf %17, %19 : vector<8x32xf32>
    %21 = vector.extract_strided_slice %11 {offsets = [0, 32], sizes = [8, 32], strides = [1, 1]} : vector<8x96xf32> to vector<8x32xf32>
    %22 = vector.extract_strided_slice %11 {offsets = [0, 64], sizes = [8, 32], strides = [1, 1]} : vector<8x96xf32> to vector<8x32xf32>
    %c0_18 = arith.constant 0 : index
    %c0_19 = arith.constant 0 : index
    %23 = vector.load %arg9[%c0_18, %c0_19] : memref<32x32xf32, #tpu.memory_space<vmem>>, vector<32x32xf32>
    %c0_20 = arith.constant 0 : index
    %c0_21 = arith.constant 0 : index
    %24 = vector.load %arg10[%c0_20, %c0_21] : memref<1x32xf32, #tpu.memory_space<vmem>>, vector<1x32xf32>
    %c0_22 = arith.constant 0 : index
    %c0_23 = arith.constant 0 : index
    %25 = vector.load %arg11[%c0_22, %c0_23] : memref<32x32xf32, #tpu.memory_space<vmem>>, vector<32x32xf32>
    %c0_24 = arith.constant 0 : index
    %c0_25 = arith.constant 0 : index
    %26 = vector.load %arg12[%c0_24, %c0_25] : memref<1x32xf32, #tpu.memory_space<vmem>>, vector<1x32xf32>
    %cst_26 = arith.constant 0.000000e+00 : f32
    %27 = vector.broadcast %cst_26 : f32 to vector<8x32xf32>
    %28 = arith.maximumf %20, %27 : vector<8x32xf32>
    %cst_27 = arith.constant dense<0.000000e+00> : vector<8x32xf32>
    %29 = tpu.matmul %28, %23, %cst_27 {dimension_numbers = #tpu.dot_dimension_numbers<[1], [0], [0], [1], [0, 0, 1, 1], [], []>} : vector<8x32xf32>, vector<32x32xf32>, vector<8x32xf32> -> vector<8x32xf32>
    %30 = vector.broadcast %24 : vector<1x32xf32> to vector<8x32xf32>
    %31 = arith.addf %29, %30 : vector<8x32xf32>
    %cst_28 = arith.constant 0.000000e+00 : f32
    %32 = vector.broadcast %cst_28 : f32 to vector<8x32xf32>
    %33 = arith.maximumf %31, %32 : vector<8x32xf32>
    %cst_29 = arith.constant dense<0.000000e+00> : vector<8x32xf32>
    %34 = tpu.matmul %33, %25, %cst_29 {dimension_numbers = #tpu.dot_dimension_numbers<[1], [0], [0], [1], [0, 0, 1, 1], [], []>} : vector<8x32xf32>, vector<32x32xf32>, vector<8x32xf32> -> vector<8x32xf32>
    %35 = vector.broadcast %26 : vector<1x32xf32> to vector<8x32xf32>
    %36 = arith.addf %34, %35 : vector<8x32xf32>
    %cst_30 = arith.constant 0.000000e+00 : f32
    %37 = vector.broadcast %cst_30 : f32 to vector<8x32xf32>
    %38 = arith.subf %37, %21 : vector<8x32xf32>
    %39 = math.exp %38 : vector<8x32xf32>
    %cst_31 = arith.constant 1.000000e+00 : f32
    %40 = vector.broadcast %cst_31 : f32 to vector<8x32xf32>
    %41 = arith.addf %40, %39 : vector<8x32xf32>
    %cst_32 = arith.constant 1.000000e+00 : f32
    %42 = vector.broadcast %cst_32 : f32 to vector<8x32xf32>
    %43 = arith.divf %42, %41 : vector<8x32xf32>
    %44 = arith.mulf %36, %43 : vector<8x32xf32>
    %45 = arith.addf %20, %44 : vector<8x32xf32>
    %c0_33 = arith.constant 0 : index
    %c0_34 = arith.constant 0 : index
    %46 = vector.load %arg13[%c0_33, %c0_34] : memref<32x32xf32, #tpu.memory_space<vmem>>, vector<32x32xf32>
    %c0_35 = arith.constant 0 : index
    %c0_36 = arith.constant 0 : index
    %47 = vector.load %arg14[%c0_35, %c0_36] : memref<1x32xf32, #tpu.memory_space<vmem>>, vector<1x32xf32>
    %c0_37 = arith.constant 0 : index
    %c0_38 = arith.constant 0 : index
    %48 = vector.load %arg15[%c0_37, %c0_38] : memref<32x32xf32, #tpu.memory_space<vmem>>, vector<32x32xf32>
    %c0_39 = arith.constant 0 : index
    %c0_40 = arith.constant 0 : index
    %49 = vector.load %arg16[%c0_39, %c0_40] : memref<1x32xf32, #tpu.memory_space<vmem>>, vector<1x32xf32>
    %cst_41 = arith.constant 0.000000e+00 : f32
    %50 = vector.broadcast %cst_41 : f32 to vector<8x32xf32>
    %51 = arith.maximumf %45, %50 : vector<8x32xf32>
    %cst_42 = arith.constant dense<0.000000e+00> : vector<8x32xf32>
    %52 = tpu.matmul %51, %46, %cst_42 {dimension_numbers = #tpu.dot_dimension_numbers<[1], [0], [0], [1], [0, 0, 1, 1], [], []>} : vector<8x32xf32>, vector<32x32xf32>, vector<8x32xf32> -> vector<8x32xf32>
    %53 = vector.broadcast %47 : vector<1x32xf32> to vector<8x32xf32>
    %54 = arith.addf %52, %53 : vector<8x32xf32>
    %cst_43 = arith.constant 0.000000e+00 : f32
    %55 = vector.broadcast %cst_43 : f32 to vector<8x32xf32>
    %56 = arith.maximumf %54, %55 : vector<8x32xf32>
    %cst_44 = arith.constant dense<0.000000e+00> : vector<8x32xf32>
    %57 = tpu.matmul %56, %48, %cst_44 {dimension_numbers = #tpu.dot_dimension_numbers<[1], [0], [0], [1], [0, 0, 1, 1], [], []>} : vector<8x32xf32>, vector<32x32xf32>, vector<8x32xf32> -> vector<8x32xf32>
    %58 = vector.broadcast %49 : vector<1x32xf32> to vector<8x32xf32>
    %59 = arith.addf %57, %58 : vector<8x32xf32>
    %cst_45 = arith.constant 0.000000e+00 : f32
    %60 = vector.broadcast %cst_45 : f32 to vector<8x32xf32>
    %61 = arith.subf %60, %22 : vector<8x32xf32>
    %62 = math.exp %61 : vector<8x32xf32>
    %cst_46 = arith.constant 1.000000e+00 : f32
    %63 = vector.broadcast %cst_46 : f32 to vector<8x32xf32>
    %64 = arith.addf %63, %62 : vector<8x32xf32>
    %cst_47 = arith.constant 1.000000e+00 : f32
    %65 = vector.broadcast %cst_47 : f32 to vector<8x32xf32>
    %66 = arith.divf %65, %64 : vector<8x32xf32>
    %67 = arith.mulf %59, %66 : vector<8x32xf32>
    %68 = arith.addf %45, %67 : vector<8x32xf32>
    %c0_48 = arith.constant 0 : index
    %c0_49 = arith.constant 0 : index
    %69 = vector.load %arg17[%c0_48, %c0_49] : memref<32x128xf32, #tpu.memory_space<vmem>>, vector<32x128xf32>
    %cst_50 = arith.constant dense<0.000000e+00> : vector<8x128xf32>
    %70 = tpu.matmul %68, %69, %cst_50 {dimension_numbers = #tpu.dot_dimension_numbers<[1], [0], [0], [1], [0, 0, 1, 1], [], []>} : vector<8x32xf32>, vector<32x128xf32>, vector<8x128xf32> -> vector<8x128xf32>
    %c0_51 = arith.constant 0 : index
    %c0_52 = arith.constant 0 : index
    %71 = vector.load %arg18[%c0_51, %c0_52] : memref<1x128xf32, #tpu.memory_space<vmem>>, vector<1x128xf32>
    %72 = vector.broadcast %71 : vector<1x128xf32> to vector<8x128xf32>
    %73 = arith.addf %70, %72 : vector<8x128xf32>
    %74 = vector.extract_strided_slice %73 {offsets = [0, 0], sizes = [8, 40], strides = [1, 1]} : vector<8x128xf32> to vector<8x40xf32>
    %75 = vector.extract_strided_slice %73 {offsets = [0, 40], sizes = [8, 40], strides = [1, 1]} : vector<8x128xf32> to vector<8x40xf32>
    %76 = vector.extract_strided_slice %73 {offsets = [0, 80], sizes = [8, 44], strides = [1, 1]} : vector<8x128xf32> to vector<8x44xf32>
    %c0_53 = arith.constant 0 : index
    %c0_54 = arith.constant 0 : index
    %77 = vector.load %arg19[%c0_53, %c0_54] : memref<40x40xf32, #tpu.memory_space<vmem>>, vector<40x40xf32>
    %c0_55 = arith.constant 0 : index
    %c0_56 = arith.constant 0 : index
    %78 = vector.load %arg20[%c0_55, %c0_56] : memref<40x44xf32, #tpu.memory_space<vmem>>, vector<40x44xf32>
    %c0_57 = arith.constant 0 : index
    %c0_58 = arith.constant 0 : index
    %79 = vector.load %arg21[%c0_57, %c0_58] : memref<4x44xf32, #tpu.memory_space<vmem>>, vector<4x44xf32>
    %c0_59 = arith.constant 0 : index
    %c0_60 = arith.constant 0 : index
    %80 = vector.load %arg22[%c0_59, %c0_60] : memref<44x4xf32, #tpu.memory_space<vmem>>, vector<44x4xf32>
    %c0_61 = arith.constant 0 : index
    %c0_62 = arith.constant 0 : index
    %81 = vector.load %arg23[%c0_61, %c0_62] : memref<3x44xf32, #tpu.memory_space<vmem>>, vector<3x44xf32>
    %82 = vector.extract_strided_slice %81 {offsets = [0, 0], sizes = [1, 44], strides = [1, 1]} : vector<3x44xf32> to vector<1x44xf32>
    %83 = vector.extract_strided_slice %81 {offsets = [1, 0], sizes = [1, 44], strides = [1, 1]} : vector<3x44xf32> to vector<1x44xf32>
    %84 = vector.extract_strided_slice %81 {offsets = [2, 0], sizes = [1, 44], strides = [1, 1]} : vector<3x44xf32> to vector<1x44xf32>
    %cst_63 = arith.constant dense<0xFF800000> : vector<8xf32>
    %85 = vector.multi_reduction <maximumf>, %74, %cst_63 [1] : vector<8x40xf32> to vector<8xf32>
    %86 = vector.shape_cast %85 : vector<8xf32> to vector<8x1xf32>
    %87 = vector.broadcast %86 : vector<8x1xf32> to vector<8x40xf32>
    %88 = arith.subf %74, %87 : vector<8x40xf32>
    %89 = math.exp %88 : vector<8x40xf32>
    %cst_64 = arith.constant dense<0.000000e+00> : vector<8x40xf32>
    %90 = tpu.matmul %89, %77, %cst_64 {dimension_numbers = #tpu.dot_dimension_numbers<[1], [0], [0], [1], [0, 0, 1, 1], [], []>} : vector<8x40xf32>, vector<40x40xf32>, vector<8x40xf32> -> vector<8x40xf32>
    %91 = tpu.reciprocal %90 : vector<8x40xf32> -> vector<8x40xf32>
    %92 = arith.mulf %89, %91 : vector<8x40xf32>
    %cst_65 = arith.constant dense<0.000000e+00> : vector<8x44xf32>
    %93 = tpu.matmul %92, %78, %cst_65 {dimension_numbers = #tpu.dot_dimension_numbers<[1], [0], [0], [1], [0, 0, 1, 1], [], []>} : vector<8x40xf32>, vector<40x44xf32>, vector<8x44xf32> -> vector<8x44xf32>
    %94 = vector.broadcast %82 : vector<1x44xf32> to vector<8x44xf32>
    %95 = arith.addf %93, %94 : vector<8x44xf32>
    %cst_66 = arith.constant 1.000000e+00 : f32
    %96 = vector.broadcast %cst_66 : f32 to vector<1x44xf32>
    %97 = arith.subf %96, %83 : vector<1x44xf32>
    %98 = vector.broadcast %97 : vector<1x44xf32> to vector<8x44xf32>
    %99 = arith.mulf %95, %98 : vector<8x44xf32>
    %100 = vector.broadcast %83 : vector<1x44xf32> to vector<8x44xf32>
    %101 = arith.addf %99, %100 : vector<8x44xf32>
    %cst_67 = arith.constant dense<0xFF800000> : vector<8xf32>
    %102 = vector.multi_reduction <maximumf>, %75, %cst_67 [1] : vector<8x40xf32> to vector<8xf32>
    %103 = vector.shape_cast %102 : vector<8xf32> to vector<8x1xf32>
    %104 = vector.broadcast %103 : vector<8x1xf32> to vector<8x40xf32>
    %105 = arith.subf %75, %104 : vector<8x40xf32>
    %106 = math.exp %105 : vector<8x40xf32>
    %cst_68 = arith.constant dense<0.000000e+00> : vector<8x40xf32>
    %107 = tpu.matmul %106, %77, %cst_68 {dimension_numbers = #tpu.dot_dimension_numbers<[1], [0], [0], [1], [0, 0, 1, 1], [], []>} : vector<8x40xf32>, vector<40x40xf32>, vector<8x40xf32> -> vector<8x40xf32>
    %108 = tpu.reciprocal %107 : vector<8x40xf32> -> vector<8x40xf32>
    %109 = arith.mulf %106, %108 : vector<8x40xf32>
    %cst_69 = arith.constant dense<0.000000e+00> : vector<8x44xf32>
    %110 = tpu.matmul %109, %78, %cst_69 {dimension_numbers = #tpu.dot_dimension_numbers<[1], [0], [0], [1], [0, 0, 1, 1], [], []>} : vector<8x40xf32>, vector<40x44xf32>, vector<8x44xf32> -> vector<8x44xf32>
    %111 = vector.broadcast %82 : vector<1x44xf32> to vector<8x44xf32>
    %112 = arith.addf %110, %111 : vector<8x44xf32>
    %cst_70 = arith.constant 1.000000e+00 : f32
    %113 = vector.broadcast %cst_70 : f32 to vector<1x44xf32>
    %114 = arith.subf %113, %83 : vector<1x44xf32>
    %115 = vector.broadcast %114 : vector<1x44xf32> to vector<8x44xf32>
    %116 = arith.mulf %112, %115 : vector<8x44xf32>
    %117 = vector.broadcast %83 : vector<1x44xf32> to vector<8x44xf32>
    %118 = arith.addf %116, %117 : vector<8x44xf32>
    %cst_71 = arith.constant 0.000000e+00 : f32
    %119 = vector.broadcast %cst_71 : f32 to vector<8x44xf32>
    %120 = arith.maximumf %76, %119 : vector<8x44xf32>
    %121 = math.absf %76 : vector<8x44xf32>
    %cst_72 = arith.constant 0.000000e+00 : f32
    %122 = vector.broadcast %cst_72 : f32 to vector<8x44xf32>
    %123 = arith.subf %122, %121 : vector<8x44xf32>
    %124 = math.exp %123 : vector<8x44xf32>
    %cst_73 = arith.constant 1.000000e+00 : f32
    %125 = vector.broadcast %cst_73 : f32 to vector<8x44xf32>
    %126 = arith.addf %125, %124 : vector<8x44xf32>
    %127 = math.log %126 : vector<8x44xf32>
    %128 = arith.addf %120, %127 : vector<8x44xf32>
    %cst_74 = arith.constant 1.000000e-03 : f32
    %129 = vector.broadcast %cst_74 : f32 to vector<8x44xf32>
    %130 = arith.addf %129, %128 : vector<8x44xf32>
    %cst_75 = arith.constant dense<0.000000e+00> : vector<8x44xf32>
    %131 = tpu.matmul %0, %79, %cst_75 {dimension_numbers = #tpu.dot_dimension_numbers<[1], [0], [0], [1], [0, 0, 1, 1], [], []>} : vector<8x4xf32>, vector<4x44xf32>, vector<8x44xf32> -> vector<8x44xf32>
    %cst_76 = arith.constant 9.99999997E-7 : f32
    %132 = vector.broadcast %cst_76 : f32 to vector<1x44xf32>
    %133 = arith.mulf %83, %132 : vector<1x44xf32>
    %134 = vector.broadcast %133 : vector<1x44xf32> to vector<8x44xf32>
    %135 = arith.addf %101, %134 : vector<8x44xf32>
    %136 = arith.cmpf oge, %131, %135 : vector<8x44xf32>
    %137 = arith.extui %136 : vector<8x44xi1> to vector<8x44xi32>
    %138 = arith.sitofp %137 : vector<8x44xi32> to vector<8x44xf32>
    %cst_77 = arith.constant dense<0.000000e+00> : vector<8x4xf32>
    %139 = tpu.matmul %138, %80, %cst_77 {dimension_numbers = #tpu.dot_dimension_numbers<[1], [0], [0], [1], [0, 0, 1, 1], [], []>} : vector<8x44xf32>, vector<44x4xf32>, vector<8x4xf32> -> vector<8x4xf32>
    %cst_78 = arith.constant 1.000000e+00 : f32
    %140 = vector.broadcast %cst_78 : f32 to vector<8x4xf32>
    %141 = arith.subf %139, %140 : vector<8x4xf32>
    %cst_79 = arith.constant dense<0.000000e+00> : vector<8x44xf32>
    %142 = tpu.matmul %141, %79, %cst_79 {dimension_numbers = #tpu.dot_dimension_numbers<[1], [0], [0], [1], [0, 0, 1, 1], [], []>} : vector<8x4xf32>, vector<4x44xf32>, vector<8x44xf32> -> vector<8x44xf32>
    %143 = vector.broadcast %84 : vector<1x44xf32> to vector<8x44xf32>
    %144 = arith.cmpf oeq, %143, %142 : vector<8x44xf32>
    %145 = arith.extui %144 : vector<8x44xi1> to vector<8x44xi32>
    %146 = arith.sitofp %145 : vector<8x44xi32> to vector<8x44xf32>
    %cst_80 = arith.constant 1.000000e+00 : f32
    %147 = vector.broadcast %cst_80 : f32 to vector<8x44xf32>
    %148 = arith.addf %142, %147 : vector<8x44xf32>
    %149 = vector.broadcast %84 : vector<1x44xf32> to vector<8x44xf32>
    %150 = arith.cmpf oeq, %149, %148 : vector<8x44xf32>
    %151 = arith.extui %150 : vector<8x44xi1> to vector<8x44xi32>
    %152 = arith.sitofp %151 : vector<8x44xi32> to vector<8x44xf32>
    %153 = arith.subf %152, %146 : vector<8x44xf32>
    %154 = arith.mulf %101, %146 : vector<8x44xf32>
    %cst_81 = arith.constant dense<0.000000e+00> : vector<8x4xf32>
    %155 = tpu.matmul %154, %80, %cst_81 {dimension_numbers = #tpu.dot_dimension_numbers<[1], [0], [0], [1], [0, 0, 1, 1], [], []>} : vector<8x44xf32>, vector<44x4xf32>, vector<8x4xf32> -> vector<8x4xf32>
    %156 = arith.mulf %101, %153 : vector<8x44xf32>
    %cst_82 = arith.constant dense<0.000000e+00> : vector<8x4xf32>
    %157 = tpu.matmul %156, %80, %cst_82 {dimension_numbers = #tpu.dot_dimension_numbers<[1], [0], [0], [1], [0, 0, 1, 1], [], []>} : vector<8x44xf32>, vector<44x4xf32>, vector<8x4xf32> -> vector<8x4xf32>
    %158 = arith.mulf %118, %146 : vector<8x44xf32>
    %cst_83 = arith.constant dense<0.000000e+00> : vector<8x4xf32>
    %159 = tpu.matmul %158, %80, %cst_83 {dimension_numbers = #tpu.dot_dimension_numbers<[1], [0], [0], [1], [0, 0, 1, 1], [], []>} : vector<8x44xf32>, vector<44x4xf32>, vector<8x4xf32> -> vector<8x4xf32>
    %160 = arith.mulf %118, %153 : vector<8x44xf32>
    %cst_84 = arith.constant dense<0.000000e+00> : vector<8x4xf32>
    %161 = tpu.matmul %160, %80, %cst_84 {dimension_numbers = #tpu.dot_dimension_numbers<[1], [0], [0], [1], [0, 0, 1, 1], [], []>} : vector<8x44xf32>, vector<44x4xf32>, vector<8x4xf32> -> vector<8x4xf32>
    %162 = arith.mulf %130, %146 : vector<8x44xf32>
    %cst_85 = arith.constant dense<0.000000e+00> : vector<8x4xf32>
    %163 = tpu.matmul %162, %80, %cst_85 {dimension_numbers = #tpu.dot_dimension_numbers<[1], [0], [0], [1], [0, 0, 1, 1], [], []>} : vector<8x44xf32>, vector<44x4xf32>, vector<8x4xf32> -> vector<8x4xf32>
    %164 = arith.mulf %130, %152 : vector<8x44xf32>
    %cst_86 = arith.constant dense<0.000000e+00> : vector<8x4xf32>
    %165 = tpu.matmul %164, %80, %cst_86 {dimension_numbers = #tpu.dot_dimension_numbers<[1], [0], [0], [1], [0, 0, 1, 1], [], []>} : vector<8x44xf32>, vector<44x4xf32>, vector<8x4xf32> -> vector<8x4xf32>
    %166 = tpu.reciprocal %157 : vector<8x4xf32> -> vector<8x4xf32>
    %167 = arith.mulf %161, %166 : vector<8x4xf32>
    %168 = arith.subf %0, %155 : vector<8x4xf32>
    %169 = arith.mulf %168, %166 : vector<8x4xf32>
    %cst_87 = arith.constant 1.000000e+00 : f32
    %170 = vector.broadcast %cst_87 : f32 to vector<8x4xf32>
    %171 = arith.subf %170, %169 : vector<8x4xf32>
    %172 = arith.mulf %169, %171 : vector<8x4xf32>
    %173 = arith.mulf %167, %169 : vector<8x4xf32>
    %174 = arith.mulf %173, %169 : vector<8x4xf32>
    %175 = arith.mulf %163, %172 : vector<8x4xf32>
    %176 = arith.addf %174, %175 : vector<8x4xf32>
    %177 = arith.mulf %161, %176 : vector<8x4xf32>
    %178 = arith.addf %163, %165 : vector<8x4xf32>
    %cst_88 = arith.constant 2.000000e+00 : f32
    %179 = vector.broadcast %cst_88 : f32 to vector<8x4xf32>
    %180 = arith.mulf %179, %167 : vector<8x4xf32>
    %181 = arith.subf %178, %180 : vector<8x4xf32>
    %182 = arith.mulf %181, %172 : vector<8x4xf32>
    %183 = arith.addf %167, %182 : vector<8x4xf32>
    %184 = tpu.reciprocal %183 : vector<8x4xf32> -> vector<8x4xf32>
    %185 = arith.mulf %177, %184 : vector<8x4xf32>
    %186 = arith.addf %159, %185 : vector<8x4xf32>
    %187 = arith.mulf %167, %167 : vector<8x4xf32>
    %188 = arith.mulf %165, %169 : vector<8x4xf32>
    %189 = arith.mulf %188, %169 : vector<8x4xf32>
    %cst_89 = arith.constant 2.000000e+00 : f32
    %190 = vector.broadcast %cst_89 : f32 to vector<8x4xf32>
    %191 = arith.mulf %190, %167 : vector<8x4xf32>
    %192 = arith.mulf %191, %172 : vector<8x4xf32>
    %193 = arith.addf %189, %192 : vector<8x4xf32>
    %cst_90 = arith.constant 1.000000e+00 : f32
    %194 = vector.broadcast %cst_90 : f32 to vector<8x4xf32>
    %195 = arith.subf %194, %169 : vector<8x4xf32>
    %196 = arith.mulf %163, %195 : vector<8x4xf32>
    %cst_91 = arith.constant 1.000000e+00 : f32
    %197 = vector.broadcast %cst_91 : f32 to vector<8x4xf32>
    %198 = arith.subf %197, %169 : vector<8x4xf32>
    %199 = arith.mulf %196, %198 : vector<8x4xf32>
    %200 = arith.addf %193, %199 : vector<8x4xf32>
    %201 = arith.mulf %187, %200 : vector<8x4xf32>
    %202 = math.log %201 : vector<8x4xf32>
    %203 = math.log %183 : vector<8x4xf32>
    %cst_92 = arith.constant 2.000000e+00 : f32
    %204 = vector.broadcast %cst_92 : f32 to vector<8x4xf32>
    %205 = arith.mulf %204, %203 : vector<8x4xf32>
    %206 = arith.subf %202, %205 : vector<8x4xf32>
    %c0_93 = arith.constant 0 : index
    %c0_94 = arith.constant 0 : index
    %207 = vector.load %arg24[%c0_93, %c0_94] : memref<8x4xf32, #tpu.memory_space<vmem>>, vector<8x4xf32>
    tpu.vector_store %arg24[%c0_93, %c0_94], %186 {strides = array<i32>} : memref<8x4xf32, #tpu.memory_space<vmem>>, vector<8x4xf32>,
    %cst_95 = arith.constant dense<0.000000e+00> : vector<8xf32>
    %208 = vector.multi_reduction <add>, %206, %cst_95 [1] : vector<8x4xf32> to vector<8xf32>
    %209 = vector.shape_cast %208 : vector<8xf32> to vector<8x1xf32>
    %c0_96 = arith.constant 0 : index
    %c0_97 = arith.constant 0 : index
    %210 = vector.load %arg25[%c0_96, %c0_97] : memref<8x1xf32, #tpu.memory_space<vmem>>, vector<8x1xf32>
    tpu.vector_store %arg25[%c0_96, %c0_97], %209 {strides = array<i32>} : memref<8x1xf32, #tpu.memory_space<vmem>>, vector<8x1xf32>,
    return
  }
  func.func @transform_0(%arg0: i32) -> (i32, i32) {
    %c0_i32 = arith.constant 0 : i32
    %c0_i32_0 = arith.constant 0 : i32
    return %arg0, %c0_i32 : i32, i32
  }
  func.func @transform_1(%arg0: i32) -> (i32, i32) {
    %c0_i32 = arith.constant 0 : i32
    %c0_i32_0 = arith.constant 0 : i32
    return %arg0, %c0_i32 : i32, i32
  }
  func.func @transform_2(%arg0: i32) -> (i32, i32) {
    %c0_i32 = arith.constant 0 : i32
    %c0_i32_0 = arith.constant 0 : i32
    %c0_i32_1 = arith.constant 0 : i32
    return %c0_i32, %c0_i32_0 : i32, i32
  }
  func.func @transform_3(%arg0: i32) -> (i32, i32) {
    %c0_i32 = arith.constant 0 : i32
    %c0_i32_0 = arith.constant 0 : i32
    %c0_i32_1 = arith.constant 0 : i32
    return %c0_i32, %c0_i32_0 : i32, i32
  }
  func.func @transform_4(%arg0: i32) -> (i32, i32) {
    %c0_i32 = arith.constant 0 : i32
    %c0_i32_0 = arith.constant 0 : i32
    %c0_i32_1 = arith.constant 0 : i32
    return %c0_i32, %c0_i32_0 : i32, i32
  }
  func.func @transform_5(%arg0: i32) -> (i32, i32) {
    %c0_i32 = arith.constant 0 : i32
    %c0_i32_0 = arith.constant 0 : i32
    %c0_i32_1 = arith.constant 0 : i32
    return %c0_i32, %c0_i32_0 : i32, i32
  }
  func.func @transform_6(%arg0: i32) -> (i32, i32) {
    %c0_i32 = arith.constant 0 : i32
    %c0_i32_0 = arith.constant 0 : i32
    %c0_i32_1 = arith.constant 0 : i32
    return %c0_i32, %c0_i32_0 : i32, i32
  }
  func.func @transform_7(%arg0: i32) -> (i32, i32) {
    %c0_i32 = arith.constant 0 : i32
    %c0_i32_0 = arith.constant 0 : i32
    %c0_i32_1 = arith.constant 0 : i32
    return %c0_i32, %c0_i32_0 : i32, i32
  }
  func.func @transform_8(%arg0: i32) -> (i32, i32) {
    %c0_i32 = arith.constant 0 : i32
    %c0_i32_0 = arith.constant 0 : i32
    %c0_i32_1 = arith.constant 0 : i32
    return %c0_i32, %c0_i32_0 : i32, i32
  }
  func.func @transform_9(%arg0: i32) -> (i32, i32) {
    %c0_i32 = arith.constant 0 : i32
    %c0_i32_0 = arith.constant 0 : i32
    %c0_i32_1 = arith.constant 0 : i32
    return %c0_i32, %c0_i32_0 : i32, i32
  }
  func.func @transform_10(%arg0: i32) -> (i32, i32) {
    %c0_i32 = arith.constant 0 : i32
    %c0_i32_0 = arith.constant 0 : i32
    %c0_i32_1 = arith.constant 0 : i32
    return %c0_i32, %c0_i32_0 : i32, i32
  }
  func.func @transform_11(%arg0: i32) -> (i32, i32) {
    %c0_i32 = arith.constant 0 : i32
    %c0_i32_0 = arith.constant 0 : i32
    %c0_i32_1 = arith.constant 0 : i32
    return %c0_i32, %c0_i32_0 : i32, i32
  }
  func.func @transform_12(%arg0: i32) -> (i32, i32) {
    %c0_i32 = arith.constant 0 : i32
    %c0_i32_0 = arith.constant 0 : i32
    %c0_i32_1 = arith.constant 0 : i32
    return %c0_i32, %c0_i32_0 : i32, i32
  }
  func.func @transform_13(%arg0: i32) -> (i32, i32) {
    %c0_i32 = arith.constant 0 : i32
    %c0_i32_0 = arith.constant 0 : i32
    %c0_i32_1 = arith.constant 0 : i32
    return %c0_i32, %c0_i32_0 : i32, i32
  }
  func.func @transform_14(%arg0: i32) -> (i32, i32) {
    %c0_i32 = arith.constant 0 : i32
    %c0_i32_0 = arith.constant 0 : i32
    %c0_i32_1 = arith.constant 0 : i32
    return %c0_i32, %c0_i32_0 : i32, i32
  }
  func.func @transform_15(%arg0: i32) -> (i32, i32) {
    %c0_i32 = arith.constant 0 : i32
    %c0_i32_0 = arith.constant 0 : i32
    %c0_i32_1 = arith.constant 0 : i32
    return %c0_i32, %c0_i32_0 : i32, i32
  }
  func.func @transform_16(%arg0: i32) -> (i32, i32) {
    %c0_i32 = arith.constant 0 : i32
    %c0_i32_0 = arith.constant 0 : i32
    %c0_i32_1 = arith.constant 0 : i32
    return %c0_i32, %c0_i32_0 : i32, i32
  }
  func.func @transform_17(%arg0: i32) -> (i32, i32) {
    %c0_i32 = arith.constant 0 : i32
    %c0_i32_0 = arith.constant 0 : i32
    %c0_i32_1 = arith.constant 0 : i32
    return %c0_i32, %c0_i32_0 : i32, i32
  }
  func.func @transform_18(%arg0: i32) -> (i32, i32) {
    %c0_i32 = arith.constant 0 : i32
    %c0_i32_0 = arith.constant 0 : i32
    %c0_i32_1 = arith.constant 0 : i32
    return %c0_i32, %c0_i32_0 : i32, i32
  }
  func.func @transform_19(%arg0: i32) -> (i32, i32) {
    %c0_i32 = arith.constant 0 : i32
    %c0_i32_0 = arith.constant 0 : i32
    %c0_i32_1 = arith.constant 0 : i32
    return %c0_i32, %c0_i32_0 : i32, i32
  }
  func.func @transform_20(%arg0: i32) -> (i32, i32) {
    %c0_i32 = arith.constant 0 : i32
    %c0_i32_0 = arith.constant 0 : i32
    %c0_i32_1 = arith.constant 0 : i32
    return %c0_i32, %c0_i32_0 : i32, i32
  }
  func.func @transform_21(%arg0: i32) -> (i32, i32) {
    %c0_i32 = arith.constant 0 : i32
    %c0_i32_0 = arith.constant 0 : i32
    %c0_i32_1 = arith.constant 0 : i32
    return %c0_i32, %c0_i32_0 : i32, i32
  }
  func.func @transform_22(%arg0: i32) -> (i32, i32) {
    %c0_i32 = arith.constant 0 : i32
    %c0_i32_0 = arith.constant 0 : i32
    %c0_i32_1 = arith.constant 0 : i32
    return %c0_i32, %c0_i32_0 : i32, i32
  }
  func.func @transform_23(%arg0: i32) -> (i32, i32) {
    %c0_i32 = arith.constant 0 : i32
    %c0_i32_0 = arith.constant 0 : i32
    return %arg0, %c0_i32 : i32, i32
  }
  func.func @transform_24(%arg0: i32) -> (i32, i32) {
    %c0_i32 = arith.constant 0 : i32
    %c0_i32_0 = arith.constant 0 : i32
    return %arg0, %c0_i32 : i32, i32
  }
}

</mosaic_0001>

<bundles_post_ra>
// kernel: tpu_custom_call.1
= control target key start
LH: loop header
LB: loop body
LE: loop exit
PB: predicated region body
PF: predicated region fallthrough
CT: control target
= control target key end

     0   :  { %s3615_s0 = inlined_call_operand.vmem [shape: f32[8,4], index: 0, kind: input, shape index: {}]   ;;  %s3616_s1 = inlined_call_operand.hbm [shape: f32[8,8], index: 1, kind: input, shape index: {}]   ;;  %s3617_s2 = inlined_call_operand.hbm [shape: f32[4,32], index: 2, kind: input, shape index: {}]   ;;  %s3618_s3 = inlined_call_operand.hbm [shape: f32[1,32], index: 3, kind: input, shape index: {}]   ;;  %s3619_s4 = inlined_call_operand.hbm [shape: f32[8,96], index: 4, kind: input, shape index: {}]   ;;  %s3620_s5 = inlined_call_operand.hbm [shape: f32[1,96], index: 5, kind: input, shape index: {}]   ;;  %s3621_s6 = inlined_call_operand.hbm [shape: f32[32,32], index: 6, kind: input, shape index: {}]   ;;  %s3622_s7 = inlined_call_operand.hbm [shape: f32[1,32], index: 7, kind: input, shape index: {}]   ;;  %s3623_s8 = inlined_call_operand.hbm [shape: f32[32,32], index: 8, kind: input, shape index: {}]   ;;  %s3624_s9 = inlined_call_operand.hbm [shape: f32[1,32], index: 9, kind: input, shape index: {}]   ;;  %s3625_s10 = inlined_call_operand.hbm [shape: f32[32,32], index: 10, kind: input, shape index: {}]   ;;  %s3626_s11 = inlined_call_operand.hbm [shape: f32[1,32], index: 11, kind: input, shape index: {}]   ;;  %s3627_s12 = inlined_call_operand.hbm [shape: f32[32,32], index: 12, kind: input, shape index: {}]   ;;  %s3628_s13 = inlined_call_operand.hbm [shape: f32[1,32], index: 13, kind: input, shape index: {}]   ;;  %s3629_s14 = inlined_call_operand.vmem [shape: f32[32,32], index: 14, kind: input, shape index: {}]   ;;  %s3630_s15 = inlined_call_operand.hbm [shape: f32[1,32], index: 15, kind: input, shape index: {}]   ;;  %s3631_s16 = inlined_call_operand.hbm [shape: f32[32,128], index: 16, kind: input, shape index: {}]   ;;  %s3632_s17 = inlined_call_operand.vmem [shape: f32[1,128], index: 17, kind: input, shape index: {}]   ;;  %s3633_s18 = inlined_call_operand.vmem [shape: f32[40,40], index: 18, kind: input, shape index: {}]   ;;  %s3634_s19 = inlined_call_operand.vmem [shape: f32[40,44], index: 19, kind: input, shape index: {}]   ;;  %s3635_s20 = inlined_call_operand.vmem [shape: f32[4,44], index: 20, kind: input, shape index: {}]   ;;  %s3636_s21 = inlined_call_operand.vmem [shape: f32[44,4], index: 21, kind: input, shape index: {}]   ;;  %s3637_s22 = inlined_call_operand.vmem [shape: f32[3,44], index: 22, kind: input, shape index: {}]   ;;  %s3638_s23 = inlined_call_operand.vmem [shape: f32[8,4], index: 23, kind: output, shape index: {0}]   ;;  %s3639_s24 = inlined_call_operand.vmem [shape: f32[8,1], index: 24, kind: output, shape index: {1}]  }
   0x1   :  { %3649 = sst [smem:[#allocation33_spill]] %s3615_s0 }
   0x2   :  { %3650 = sst [smem:[#allocation34_spill]] %s3616_s1 }
   0x3   :  { %3651 = sst [smem:[#allocation35_spill]] %s3617_s2 }
   0x4   :  { %3652 = sst [smem:[#allocation36_spill]] %s3618_s3 }
   0x5   :  { %3653 = sst [smem:[#allocation37_spill]] %s3619_s4 }
   0x6   :  { %3654 = sst [smem:[#allocation38_spill]] %s3620_s5 }
   0x7   :  { %3655 = sst [smem:[#allocation39_spill]] %s3621_s6 }
   0x8   :  { %3656 = sst [smem:[#allocation40_spill]] %s3622_s7 }
   0x9   :  { %3657 = sst [smem:[#allocation41_spill]] %s3623_s8 }
   0xa   :  { %3658 = sst [smem:[#allocation42_spill]] %s3636_s21 }
   0xb   :  { %3659 = sst [smem:[#allocation43_spill]] %s3638_s23 }
   0xc   :  { %3660 = sst [smem:[#allocation44_spill]] %s3639_s24 }
   0xd   :  { %30 = vsyncpa [#allocation3], 0 }
   0xe   :  { %31 = vsyncpa [#allocation5], 0 }
   0xf   :  { %32 = vsyncpa [#allocation8], 0 }
  0x10   :  { %33 = vsyncpa [#allocation11], 0 }
  0x11   :  { %34 = vsyncpa [#allocation14], 0 }
  0x12   :  { %35 = vsyncpa [#allocation17], 0 }
  0x13   :  { %36 = vsyncpa [#allocation20], 0 }
  0x14   :  { %37 = vsyncpa [#allocation23], 0  ;;  %s3006_s5 = smov [#allocation4]   ;;  %s3007_s27 = smov [#allocation7]  }
  0x15   :  { %s56_s26 = sshll.u32 %s3006_s5, 4  ;;  %s76_s28 = sshll.u32 %s3007_s27, 4  ;;  %s57_s26 = int_to_ptr.vmem [resolvable:$true] %s56_s26  ;;  %s77_s28 = int_to_ptr.vmem [resolvable:$true] %s76_s28 }
  0x16   :  { %s3661_s29 = sld [smem:[#allocation35_spill]] }
  0x1c   :  { %s2660_s0 = scalar_lea.hbm %s3661_s29, 64 }
  0x1d   :  { %p2661_p0 = scmp.ne.s32.totalorder %s3661_s29, %s2660_s0  ;;  %p2664_p1 = scmp.lt.u32.totalorder %s2660_s0, %s3661_s29 }
  0x1f   :  { %p2666_p2 = pnand %p2664_p1, %p2661_p0 }
  0x21   :  { %2669 = shalt.err (!%p2666_p2)
}
  0x22   :  { %s2670_s8 = scalar_lea.vmem %s57_s26, 64  ;;  %p2675_p4 = scmp.lt.s32.totalorder %s57_s26, %s57_s26 }
  0x23   :  { %p2671_p3 = scmp.ne.s32.totalorder %s57_s26, %s2670_s8  ;;  %p2676_p5 = scmp.lt.s32.totalorder %s2670_s8, %s2670_s8 }
  0x25   :  { %p2677_p6 = por %p2676_p5, %p2675_p4 }
  0x27   :  { %p2678_p7 = pnand %p2677_p6, %p2671_p3 }
  0x29   :  { %2681 = shalt.err (!%p2678_p7)
}
  0x2a   :  { %59 = dma.hbm_to_vmem [thread:$0]  %s3661_s29, 64, %s57_s26, [#allocation5]  }
  0x2b   :  { %s3662_s6 = sld [smem:[#allocation37_spill]] }
  0x31   :  { %s2682_s2 = scalar_lea.hbm %s3662_s6, 128 }
  0x32   :  { %p2683_p8 = scmp.ne.s32.totalorder %s3662_s6, %s2682_s2  ;;  %p2686_p9 = scmp.lt.u32.totalorder %s2682_s2, %s3662_s6 }
  0x34   :  { %p2688_p10 = pnand %p2686_p9, %p2683_p8 }
  0x36   :  { %2691 = shalt.err (!%p2688_p10)
}
  0x37   :  { %s2692_s25 = scalar_lea.vmem %s77_s28, 128  ;;  %p2697_p12 = scmp.lt.s32.totalorder %s77_s28, %s77_s28 }
  0x38   :  { %p2693_p11 = scmp.ne.s32.totalorder %s77_s28, %s2692_s25  ;;  %p2698_p13 = scmp.lt.s32.totalorder %s2692_s25, %s2692_s25 }
  0x3a   :  { %p2699_p0 = por %p2698_p13, %p2697_p12 }
  0x3c   :  { %p2700_p1 = pnand %p2699_p0, %p2693_p11 }
  0x3e   :  { %2703 = shalt.err (!%p2700_p1)
}
  0x3f   :  { %79 = dma.hbm_to_vmem [thread:$0]  %s3662_s6, 128, %s77_s28, [#allocation8]  }
  0x40   :  { %s3008_s8 = smov [#allocation10]   ;;  %s3663_s27 = sld [smem:[#allocation39_spill]] }
  0x41   :  { %s95_s4 = sshll.u32 %s3008_s8, 4  ;;  %s96_s4 = int_to_ptr.vmem [resolvable:$true] %s95_s4 }
  0x46   :  { %s2704_s2 = scalar_lea.hbm %s3663_s27, 512 }
  0x47   :  { %p2705_p2 = scmp.ne.s32.totalorder %s3663_s27, %s2704_s2  ;;  %p2708_p3 = scmp.lt.u32.totalorder %s2704_s2, %s3663_s27 }
  0x49   :  { %p2710_p4 = pnand %p2708_p3, %p2705_p2 }
  0x4b   :  { %2713 = shalt.err (!%p2710_p4)
}
  0x4c   :  { %s2714_s25 = scalar_lea.vmem %s96_s4, 512  ;;  %p2719_p6 = scmp.lt.s32.totalorder %s96_s4, %s96_s4 }
  0x4d   :  { %p2715_p5 = scmp.ne.s32.totalorder %s96_s4, %s2714_s25  ;;  %p2720_p7 = scmp.lt.s32.totalorder %s2714_s25, %s2714_s25 }
  0x4f   :  { %p2721_p8 = por %p2720_p7, %p2719_p6 }
  0x51   :  { %p2722_p9 = pnand %p2721_p8, %p2715_p5 }
  0x53   :  { %2725 = shalt.err (!%p2722_p9)
}
  0x54   :  { %s3009_s28 = smov 128   ;;  %s3010_s6 = smov 8  }
  0x55   :  { %101 = dma.hbm_to_vmem [thread:$0]  %s3663_s27, 512, %s96_s4, [#allocation11], %s3009_s28, %s3009_s28, %s3010_s6  }
  0x56   :  { %s3011_s8 = smov [#allocation13]   ;;  %s3012_s5 = smov [#allocation16]  }
  0x57   :  { %s117_s1 = sshll.u32 %s3011_s8, 4  ;;  %s139_s2 = sshll.u32 %s3012_s5, 4  ;;  %s118_s1 = int_to_ptr.vmem [resolvable:$true] %s117_s1  ;;  %s140_s2 = int_to_ptr.vmem [resolvable:$true] %s139_s2 }
  0x58   :  { %s3664_s0 = sld [smem:[#allocation41_spill]] }
  0x5e   :  { %s2726_s3 = scalar_lea.hbm %s3664_s0, 512 }
  0x5f   :  { %p2727_p10 = scmp.ne.s32.totalorder %s3664_s0, %s2726_s3  ;;  %p2730_p11 = scmp.lt.u32.totalorder %s2726_s3, %s3664_s0 }
  0x61   :  { %p2732_p12 = pnand %p2730_p11, %p2727_p10 }
  0x63   :  { %2735 = shalt.err (!%p2732_p12)
}
  0x64   :  { %s2736_s4 = scalar_lea.vmem %s118_s1, 512  ;;  %p2741_p0 = scmp.lt.s32.totalorder %s118_s1, %s118_s1 }
  0x65   :  { %p2737_p13 = scmp.ne.s32.totalorder %s118_s1, %s2736_s4  ;;  %p2742_p1 = scmp.lt.s32.totalorder %s2736_s4, %s2736_s4 }
  0x67   :  { %p2743_p2 = por %p2742_p1, %p2741_p0 }
  0x69   :  { %p2744_p3 = pnand %p2743_p2, %p2737_p13 }
  0x6b   :  { %2747 = shalt.err (!%p2744_p3)
}
  0x6c   :  { %123 = dma.hbm_to_vmem [thread:$0]  %s3664_s0, 512, %s118_s1, [#allocation14], %s3009_s28, %s3009_s28, %s3010_s6  }
  0x6d   :  { %s2748_s23 = scalar_lea.hbm %s3625_s10, 512 }
  0x6e   :  { %p2749_p4 = scmp.ne.s32.totalorder %s3625_s10, %s2748_s23  ;;  %p2752_p5 = scmp.lt.u32.totalorder %s2748_s23, %s3625_s10 }
  0x70   :  { %p2754_p6 = pnand %p2752_p5, %p2749_p4 }
  0x72   :  { %2757 = shalt.err (!%p2754_p6)
}
  0x73   :  { %s2758_s30 = scalar_lea.vmem %s140_s2, 512  ;;  %p2763_p8 = scmp.lt.s32.totalorder %s140_s2, %s140_s2 }
  0x74   :  { %p2759_p7 = scmp.ne.s32.totalorder %s140_s2, %s2758_s30  ;;  %p2764_p9 = scmp.lt.s32.totalorder %s2758_s30, %s2758_s30 }
  0x76   :  { %p2765_p10 = por %p2764_p9, %p2763_p8 }
  0x78   :  { %p2766_p11 = pnand %p2765_p10, %p2759_p7 }
  0x7a   :  { %2769 = shalt.err (!%p2766_p11)
}
  0x7b   :  { %145 = dma.hbm_to_vmem [thread:$0]  %s3625_s10, 512, %s140_s2, [#allocation17], %s3009_s28, %s3009_s28, %s3010_s6  }
  0x7c   :  { %s3013_s3 = smov [#allocation19]   ;;  %s3014_s4 = smov [#allocation22]  }
  0x7d   :  { %s161_s25 = sshll.u32 %s3013_s3, 4  ;;  %s186_s27 = sshll.u32 %s3014_s4, 4  ;;  %s162_s25 = int_to_ptr.vmem [resolvable:$true] %s161_s25  ;;  %s187_s27 = int_to_ptr.vmem [resolvable:$true] %s186_s27 }
  0x7e   :  { %s2770_s21 = scalar_lea.hbm %s3627_s12, 512 }
  0x7f   :  { %p2771_p12 = scmp.ne.s32.totalorder %s3627_s12, %s2770_s21  ;;  %p2774_p13 = scmp.lt.u32.totalorder %s2770_s21, %s3627_s12 }
  0x81   :  { %p2776_p0 = pnand %p2774_p13, %p2771_p12 }
  0x83   :  { %2779 = shalt.err (!%p2776_p0)
}
  0x84   :  { %s2780_s10 = scalar_lea.vmem %s162_s25, 512  ;;  %p2785_p2 = scmp.lt.s32.totalorder %s162_s25, %s162_s25 }
  0x85   :  { %p2781_p1 = scmp.ne.s32.totalorder %s162_s25, %s2780_s10  ;;  %p2786_p3 = scmp.lt.s32.totalorder %s2780_s10, %s2780_s10 }
  0x87   :  { %p2787_p4 = por %p2786_p3, %p2785_p2 }
  0x89   :  { %p2788_p5 = pnand %p2787_p4, %p2781_p1 }
  0x8b   :  { %2791 = shalt.err (!%p2788_p5)
}
  0x8c   :  { %167 = dma.hbm_to_vmem [thread:$0]  %s3627_s12, 512, %s162_s25, [#allocation20], %s3009_s28, %s3009_s28, %s3010_s6  }
  0x8d   :  { %s2792_s0 = scalar_lea.hbm %s3630_s15, 16 }
  0x8e   :  { %p2793_p6 = scmp.ne.s32.totalorder %s3630_s15, %s2792_s0  ;;  %p2796_p7 = scmp.lt.u32.totalorder %s2792_s0, %s3630_s15 }
  0x90   :  { %p2798_p8 = pnand %p2796_p7, %p2793_p6 }
  0x92   :  { %2801 = shalt.err (!%p2798_p8)
}
  0x93   :  { %s2802_s21 = scalar_lea.vmem %s187_s27, 16  ;;  %s2806_s23 = scalar_lea.vmem %s187_s27, 32 }
  0x94   :  { %p2803_p9 = scmp.ne.s32.totalorder %s187_s27, %s2802_s21  ;;  %p2807_p10 = scmp.lt.s32.totalorder %s187_s27, %s187_s27 }
  0x95   :  { %p2808_p11 = scmp.lt.s32.totalorder %s2806_s23, %s2802_s21 }
  0x97   :  { %p2809_p12 = por %p2808_p11, %p2807_p10 }
  0x99   :  { %p2810_p13 = pnand %p2809_p12, %p2803_p9 }
  0x9b   :  { %2813 = shalt.err (!%p2810_p13)
}
  0x9c   :  { %189 = dma.hbm_to_vmem [thread:$0]  %s3630_s15, 16, %s187_s27, [#allocation23]  }
  0x9d   :  { %s3015_s29 = smov [#allocation2]   ;;  %s3016_s5 = smov [#allocation6]  }
  0x9e   :  { %s46_s8 = sshll.u32 %s3015_s29, 4  ;;  %s66_s10 = sshll.u32 %s3016_s5, 4  ;;  %s47_s8 = int_to_ptr.vmem [resolvable:$true] %s46_s8  ;;  %s67_s10 = int_to_ptr.vmem [resolvable:$true] %s66_s10 }
  0x9f   :  { %s3665_s30 = sld [smem:[#allocation34_spill]] }
  0xa5   :  { %s2814_s1 = scalar_lea.hbm %s3665_s30, 128 }
  0xa6   :  { %p2815_p0 = scmp.ne.s32.totalorder %s3665_s30, %s2814_s1  ;;  %p2818_p1 = scmp.lt.u32.totalorder %s2814_s1, %s3665_s30 }
  0xa8   :  { %p2820_p2 = pnand %p2818_p1, %p2815_p0 }
  0xaa   :  { %2823 = shalt.err (!%p2820_p2)
}
  0xab   :  { %s2824_s15 = scalar_lea.vmem %s47_s8, 128  ;;  %p2829_p4 = scmp.lt.s32.totalorder %s47_s8, %s47_s8 }
  0xac   :  { %p2825_p3 = scmp.ne.s32.totalorder %s47_s8, %s2824_s15  ;;  %p2830_p5 = scmp.lt.s32.totalorder %s2824_s15, %s2824_s15 }
  0xae   :  { %p2831_p6 = por %p2830_p5, %p2829_p4 }
  0xb0   :  { %p2832_p7 = pnand %p2831_p6, %p2825_p3 }
  0xb2   :  { %2835 = shalt.err (!%p2832_p7)
}
  0xb3   :  { %49 = dma.hbm_to_vmem [thread:$0]  %s3665_s30, 128, %s47_s8, [#allocation3]  }
  0xb4   :  { %s3666_s12 = sld [smem:[#allocation36_spill]] }
  0xba   :  { %s2836_s25 = scalar_lea.hbm %s3666_s12, 16 }
  0xbb   :  { %p2837_p8 = scmp.ne.s32.totalorder %s3666_s12, %s2836_s25  ;;  %p2840_p9 = scmp.lt.u32.totalorder %s2836_s25, %s3666_s12 }
  0xbd   :  { %p2842_p10 = pnand %p2840_p9, %p2837_p8 }
  0xbf   :  { %2845 = shalt.err (!%p2842_p10)
}
  0xc0   :  { %s2846_s1 = scalar_lea.vmem %s67_s10, 16  ;;  %s2850_s0 = scalar_lea.vmem %s67_s10, 32 }
  0xc1   :  { %p2847_p11 = scmp.ne.s32.totalorder %s67_s10, %s2846_s1  ;;  %p2851_p12 = scmp.lt.s32.totalorder %s67_s10, %s67_s10 }
  0xc2   :  { %p2852_p13 = scmp.lt.s32.totalorder %s2850_s0, %s2846_s1 }
  0xc4   :  { %p2853_p0 = por %p2852_p13, %p2851_p12 }
  0xc6   :  { %p2854_p1 = pnand %p2853_p0, %p2847_p11 }
  0xc8   :  { %2857 = shalt.err (!%p2854_p1)
}
  0xc9   :  { %69 = dma.hbm_to_vmem [thread:$0]  %s3666_s12, 16, %s67_s10, [#allocation5]  }
  0xca   :  { %s3017_s3 = smov [#allocation9]   ;;  %s3018_s26 = smov [#allocation12]  }
  0xcb   :  { %s86_s4 = sshll.u32 %s3017_s3, 4  ;;  %s108_s15 = sshll.u32 %s3018_s26, 4  ;;  %s87_s4 = int_to_ptr.vmem [resolvable:$true] %s86_s4  ;;  %s109_s15 = int_to_ptr.vmem [resolvable:$true] %s108_s15 }
  0xcc   :  { %s3667_s21 = sld [smem:[#allocation38_spill]] }
  0xd2   :  { %s2858_s23 = scalar_lea.hbm %s3667_s21, 16 }
  0xd3   :  { %p2859_p2 = scmp.ne.s32.totalorder %s3667_s21, %s2858_s23  ;;  %p2862_p3 = scmp.lt.u32.totalorder %s2858_s23, %s3667_s21 }
  0xd5   :  { %p2864_p4 = pnand %p2862_p3, %p2859_p2 }
  0xd7   :  { %2867 = shalt.err (!%p2864_p4)
}
  0xd8   :  { %s2868_s10 = scalar_lea.vmem %s87_s4, 16  ;;  %s2872_s12 = scalar_lea.vmem %s87_s4, 32 }
  0xd9   :  { %p2869_p5 = scmp.ne.s32.totalorder %s87_s4, %s2868_s10  ;;  %p2873_p6 = scmp.lt.s32.totalorder %s87_s4, %s87_s4 }
  0xda   :  { %p2874_p7 = scmp.lt.s32.totalorder %s2872_s12, %s2868_s10 }
  0xdc   :  { %p2875_p8 = por %p2874_p7, %p2873_p6 }
  0xde   :  { %p2876_p9 = pnand %p2875_p8, %p2869_p5 }
  0xe0   :  { %2879 = shalt.err (!%p2876_p9)
}
  0xe1   :  { %89 = dma.hbm_to_vmem [thread:$0]  %s3667_s21, 16, %s87_s4, [#allocation8]  }
  0xe2   :  { %s3668_s30 = sld [smem:[#allocation40_spill]] }
  0xe8   :  { %s2880_s3 = scalar_lea.hbm %s3668_s30, 16 }
  0xe9   :  { %p2881_p10 = scmp.ne.s32.totalorder %s3668_s30, %s2880_s3  ;;  %p2884_p11 = scmp.lt.u32.totalorder %s2880_s3, %s3668_s30 }
  0xeb   :  { %p2886_p12 = pnand %p2884_p11, %p2881_p10 }
  0xed   :  { %2889 = shalt.err (!%p2886_p12)
}
  0xee   :  { %s2890_s25 = scalar_lea.vmem %s109_s15, 16  ;;  %s2894_s29 = scalar_lea.vmem %s109_s15, 32 }
  0xef   :  { %p2891_p13 = scmp.ne.s32.totalorder %s109_s15, %s2890_s25  ;;  %p2895_p0 = scmp.lt.s32.totalorder %s109_s15, %s109_s15 }
  0xf0   :  { %p2896_p1 = scmp.lt.s32.totalorder %s2894_s29, %s2890_s25 }
  0xf2   :  { %p2897_p2 = por %p2896_p1, %p2895_p0 }
  0xf4   :  { %p2898_p3 = pnand %p2897_p2, %p2891_p13 }
  0xf6   :  { %2901 = shalt.err (!%p2898_p3)
}
  0xf7   :  { %111 = dma.hbm_to_vmem [thread:$0]  %s3668_s30, 16, %s109_s15, [#allocation11]  }
  0xf8   :  { %s3019_s5 = smov [#allocation15]   ;;  %s3020_s10 = smov [#allocation18]  }
  0xf9   :  { %s130_s2 = sshll.u32 %s3019_s5, 4  ;;  %s152_s12 = sshll.u32 %s3020_s10, 4  ;;  %s131_s2 = int_to_ptr.vmem [resolvable:$true] %s130_s2  ;;  %s153_s12 = int_to_ptr.vmem [resolvable:$true] %s152_s12 }
  0xfa   :  { %s2902_s0 = scalar_lea.hbm %s3624_s9, 16 }
  0xfb   :  { %p2903_p4 = scmp.ne.s32.totalorder %s3624_s9, %s2902_s0  ;;  %p2906_p5 = scmp.lt.u32.totalorder %s2902_s0, %s3624_s9 }
  0xfd   :  { %p2908_p6 = pnand %p2906_p5, %p2903_p4 }
  0xff   :  { %2911 = shalt.err (!%p2908_p6)
}
 0x100   :  { %s2912_s15 = scalar_lea.vmem %s131_s2, 16  ;;  %s2916_s30 = scalar_lea.vmem %s131_s2, 32 }
 0x101   :  { %p2913_p7 = scmp.ne.s32.totalorder %s131_s2, %s2912_s15  ;;  %p2917_p8 = scmp.lt.s32.totalorder %s131_s2, %s131_s2 }
 0x102   :  { %p2918_p9 = scmp.lt.s32.totalorder %s2916_s30, %s2912_s15 }
 0x104   :  { %p2919_p10 = por %p2918_p9, %p2917_p8 }
 0x106   :  { %p2920_p11 = pnand %p2919_p10, %p2913_p7 }
 0x108   :  { %2923 = shalt.err (!%p2920_p11)
}
 0x109   :  { %133 = dma.hbm_to_vmem [thread:$0]  %s3624_s9, 16, %s131_s2, [#allocation14]  }
 0x10a   :  { %s2924_s4 = scalar_lea.hbm %s3626_s11, 16 }
 0x10b   :  { %p2925_p12 = scmp.ne.s32.totalorder %s3626_s11, %s2924_s4  ;;  %p2928_p13 = scmp.lt.u32.totalorder %s2924_s4, %s3626_s11 }
 0x10d   :  { %p2930_p0 = pnand %p2928_p13, %p2925_p12 }
 0x10f   :  { %2933 = shalt.err (!%p2930_p0)
}
 0x110   :  { %s2934_s1 = scalar_lea.vmem %s153_s12, 16  ;;  %s2938_s0 = scalar_lea.vmem %s153_s12, 32 }
 0x111   :  { %p2935_p1 = scmp.ne.s32.totalorder %s153_s12, %s2934_s1  ;;  %p2939_p2 = scmp.lt.s32.totalorder %s153_s12, %s153_s12 }
 0x112   :  { %p2940_p3 = scmp.lt.s32.totalorder %s2938_s0, %s2934_s1 }
 0x114   :  { %p2941_p4 = por %p2940_p3, %p2939_p2 }
 0x116   :  { %p2942_p5 = pnand %p2941_p4, %p2935_p1 }
 0x118   :  { %2945 = shalt.err (!%p2942_p5)
}
 0x119   :  { %155 = dma.hbm_to_vmem [thread:$0]  %s3626_s11, 16, %s153_s12, [#allocation17]  }
 0x11a   :  { %s3021_s8 = smov [#allocation21]   ;;  %s3022_s26 = smov [#allocation24]  }
 0x11b   :  { %s174_s3 = sshll.u32 %s3021_s8, 4  ;;  %s195_s27 = sshll.u32 %s3022_s26, 4  ;;  %s175_s3 = int_to_ptr.vmem [resolvable:$true] %s174_s3  ;;  %s196_s27 = int_to_ptr.vmem [resolvable:$true] %s195_s27 }
 0x11c   :  { %s2946_s24 = scalar_lea.hbm %s3628_s13, 16 }
 0x11d   :  { %p2947_p6 = scmp.ne.s32.totalorder %s3628_s13, %s2946_s24  ;;  %p2950_p7 = scmp.lt.u32.totalorder %s2946_s24, %s3628_s13 }
 0x11f   :  { %p2952_p8 = pnand %p2950_p7, %p2947_p6 }
 0x121   :  { %2955 = shalt.err (!%p2952_p8)
}
 0x122   :  { %s2956_s11 = scalar_lea.vmem %s175_s3, 16  ;;  %s2960_s12 = scalar_lea.vmem %s175_s3, 32 }
 0x123   :  { %p2957_p9 = scmp.ne.s32.totalorder %s175_s3, %s2956_s11  ;;  %p2961_p10 = scmp.lt.s32.totalorder %s175_s3, %s175_s3 }
 0x124   :  { %p2962_p11 = scmp.lt.s32.totalorder %s2960_s12, %s2956_s11 }
 0x126   :  { %p2963_p12 = por %p2962_p11, %p2961_p10 }
 0x128   :  { %p2964_p13 = pnand %p2963_p12, %p2957_p9 }
 0x12a   :  { %2967 = shalt.err (!%p2964_p13)
}
 0x12b   :  { %177 = dma.hbm_to_vmem [thread:$0]  %s3628_s13, 16, %s175_s3, [#allocation20]  }
 0x12c   :  { %s2968_s1 = scalar_lea.hbm %s3631_s16, 512 }
 0x12d   :  { %p2969_p0 = scmp.ne.s32.totalorder %s3631_s16, %s2968_s1  ;;  %p2972_p1 = scmp.lt.u32.totalorder %s2968_s1, %s3631_s16 }
 0x12f   :  { %p2974_p2 = pnand %p2972_p1, %p2969_p0 }
 0x131   :  { %2977 = shalt.err (!%p2974_p2)
}
 0x132   :  { %s2978_s26 = scalar_lea.vmem %s196_s27, 512  ;;  %p2983_p4 = scmp.lt.s32.totalorder %s196_s27, %s196_s27 }
 0x133   :  { %p2979_p3 = scmp.ne.s32.totalorder %s196_s27, %s2978_s26  ;;  %p2984_p5 = scmp.lt.s32.totalorder %s2978_s26, %s2978_s26 }
 0x135   :  { %p2985_p6 = por %p2984_p5, %p2983_p4 }
 0x137   :  { %p2986_p7 = pnand %p2985_p6, %p2979_p3 }
 0x139   :  { %2989 = shalt.err (!%p2986_p7)
}
 0x13a   :  { %201 = dma.hbm_to_vmem [thread:$0]  %s3631_s16, 512, %s196_s27, [#allocation23], %s3009_s28, %s3009_s28, %s3010_s6  }
 0x13b   :  { %2990 = dma.done.wait [#allocation3], 128  }
 0x13c   :  { %2991 = vsyncadd [#allocation3], 4294967168 }
 0x13d   :  { %2992 = dma.done.wait [#allocation5], 80  }
 0x13e   :  { %2993 = vsyncadd [#allocation5], 4294967216 }
 0x13f   :  { %2994 = dma.done.wait [#allocation8], 144  }
 0x140   :  { %2995 = vsyncadd [#allocation8], 4294967152 }
 0x141   :  { %2996 = dma.done.wait [#allocation11], 528  }
 0x142   :  { %2997 = vsyncadd [#allocation11], 4294966768 }
 0x143   :  { %2998 = dma.done.wait [#allocation14], 528  }
 0x144   :  { %2999 = vsyncadd [#allocation14], 4294966768 }
 0x145   :  { %3000 = dma.done.wait [#allocation17], 528  }
 0x146   :  { %3001 = vsyncadd [#allocation17], 4294966768 }
 0x147   :  { %3002 = dma.done.wait [#allocation20], 528  }
 0x148   :  { %3003 = vsyncadd [#allocation20], 4294966768 }
 0x149   :  { %3004 = dma.done.wait [#allocation23], 528  }
 0x14a   :  { %3005 = vsyncadd [#allocation23], 4294966768  ;;  %v3023_v0 = vmov 0.0   ;;  %vm3024_vm0 = vmmov 0   ;;  %vm273_vm1 = vcmask 1043456   ;;  %vm355_vm2 = vcmask 64512  }
 0x14b   :  { %2236 = vmatprep.subr.mxu1 %v3023_v0  ;;  %2238 = vmatprep.mubr.msk.f32.mxu1 %vm3024_vm0, %v3023_v0  ;;  %vm269_vm3 = vcmask 31744   ;;  %v347_v1 = vld [vmem:[#allocation7] sm:$0xff]  ;;  %v260_v2 = vld [vmem:[#allocation2] sm:$0xff]  ;;  %v261_v3 = vld [vmem:[#allocation4] sm:$0xf]  ;;  %s3669_s6 = sld [smem:[#allocation33_spill]] }
 0x14c   :  { %2231 = vmatprep.subr.mxu0 %v3023_v0  ;;  %2233 = vmatprep.mubr.msk.f32.mxu0 %vm3024_vm0, %v3023_v0  ;;  %v430_v5 = vld [vmem:[#allocation10] sm:$0xff]  ;;  %v431_v6 = vld [vmem:[#allocation10 + $0x8] sm:$0xff]  ;;  %v3025_v8 = vmov 0.0|0.0   ;;  %v432_v9 = vld [vmem:[#allocation10 + $0x10] sm:$0xff]  ;;  %vm434_vm4 = vcmask 261120   ;;  %s3026_s27 = smov 96  }
 0x14d   :  { %2237 = vmatpush3.msra.mxu1 %v347_v1  ;;  %2232 = vmatpush3.msk.msra.mxu0 %vm273_vm1, %v261_v3  ;;  %v2475_v7 = vpack.c.bf16 %v431_v6, %v430_v5  ;;  %v433_v10 = vld [vmem:[#allocation10 + $0x18] sm:$0xff]  ;;  %s3027_s15 = smov 64   ;;  %v517_v24 = vld [vmem:[#allocation13] sm:$0xff]  ;;  %v518_v25 = vld [vmem:[#allocation13 + $0x8] sm:$0xff]  ;;  %vm976_vm5 = vcmask 326656   ;;  %vm1146_vm6 = vcmask 654656  }
 0x14e   :  { %2239 = vmatmul.mubr.msk.f32.vlgmr.msra.gmra.mrb[0].mxu1 %vm355_vm2, %v260_v2  ;;  %2474 = vmatprep.subr.bf16.mxu0 %v3025_v8  ;;  %v2478_v11 = vpack.c.bf16 %v433_v10, %v432_v9  ;;  %v2080_v12 = vld [vmem:[#allocation9] ss:$0 sm:$0xff]  ;;  %v2481_v26 = vpack.c.bf16 %v518_v25, %v517_v24  ;;  %v519_v27 = vld [vmem:[#allocation13 + $0x10] sm:$0xff]  ;;  %v522_v30 = vld [vmem:[#allocation16] sm:$0xff]  ;;  %vm3030_vm7 = vmmov 1   ;;  %vm1403_vm10 = vcmask 359424  }
 0x14f   :  { %2480 = vmatprep.subr.bf16.mxu1 %v3025_v8  ;;  %2260 = vmatprep.mubr.msk.f32.mxu1 %vm3024_vm0, %v3023_v0  ;;  %v520_v28 = vld [vmem:[#allocation13 + $0x18] sm:$0xff]  ;;  %v523_v31 = vld [vmem:[#allocation16 + $0x8] sm:$0xff]  ;;  %v2077_v33 = vld [vmem:[#allocation6] ss:$0 sm:$0xff]  ;;  %s3031_s8 = smov 80   ;;  %s3032_s26 = smov 48  }
 0x150   :  { %2482 = vmatpush3.bf16.msra.mxu1 %v2481_v26  ;;  %v2484_v29 = vpack.c.bf16 %v520_v28, %v519_v27  ;;  %v2487_v32 = vpack.c.bf16 %v523_v31, %v522_v30  ;;  %v2083_v36 = vld [vmem:[#allocation12] ss:$0 sm:$0xff]  ;;  %v524_v41 = vld [vmem:[#allocation16 + $0x10] sm:$0xff]  ;;  %v2084_v44 = vld [vmem:[#allocation15] ss:$0 sm:$0xff]  ;;  %s3673_s3 = sld [smem:[#allocation43_spill]] }
 0x151   :  { %v3363_v4 = vld [vmem:[%s3669_s6] sm:$0xff]  ;;  %2483 = vmatprep.subr.bf16.mxu1 %v3025_v8  ;;  %v525_v42 = vld [vmem:[#allocation16 + $0x18] sm:$0xff]  ;;  %v699_v49 = vld [vmem:[#allocation19] sm:$0xff]  ;;  %vm2059_vm13 = vcmask 7168   ;;  %s3674_s6 = sld [smem:[#allocation44_spill]] }
 0x152   :  { %2234 = vmatmul.mubr.msk.f32.vlgmr.msra.gmra.mrb[0].mxu0 %vm269_vm3, %v3363_v4  ;;  %v2490_v43 = vpack.c.bf16 %v525_v42, %v524_v41  ;;  %v700_v50 = vld [vmem:[#allocation19 + $0x8] sm:$0xff]  ;;  %v701_v52 = vld [vmem:[#allocation19 + $0x10] sm:$0xff]  ;;  %v702_v53 = vld [vmem:[#allocation19 + $0x18] sm:$0xff] }
 0x153   :  { %2249 = vmatprep.mubr.msk.f32.mxu0 %vm3024_vm0, %v3023_v0  ;;  %2476 = vmatpush3.bf16.msra.mxu0 %v2475_v7  ;;  %v2493_v51 = vpack.c.bf16 %v700_v50, %v699_v49  ;;  %v2496_v54 = vpack.c.bf16 %v702_v53, %v701_v52  ;;  %v704_v55 = vld [vmem:[%s3629_s14] sm:$0xff]  ;;  %v705_v56 = vld [vmem:[%s3629_s14 + $0x8] sm:$0xff]  ;;  %v2086_v58 = vld [vmem:[#allocation18] ss:$0 sm:$0xff] }
 0x154   :  { %2477 = vmatprep.subr.bf16.mxu0 %v3025_v8  ;;  %2485 = vmatpush3.bf16.msra.mxu1 %v2484_v29  ;;  %v2499_v57 = vpack.c.bf16 %v705_v56, %v704_v55  ;;  %v706_v3 = vld [vmem:[%s3629_s14 + $0x10] sm:$0xff]  ;;  %v707_v5 = vld [vmem:[%s3629_s14 + $0x18] sm:$0xff]  ;;  %v2092_v26 = vld [vmem:[%s3632_s17] ss:$0 sm:$0xff]  ;;  %s3670_s14 = sld [smem:[#allocation42_spill]] }
 0x155   :  { %2492 = vmatprep.subr.bf16.mxu1 %v3025_v8  ;;  %v2502_v6 = vpack.c.bf16 %v707_v5, %v706_v3  ;;  %v2088_v7 = vld [vmem:[#allocation21] ss:$0 sm:$0xff]  ;;  %v967_v53 = vld [vmem:[%s3634_s19 + $0x20] sm:$0xff]  ;;  %vm3523_vm8 = vmpackc.low %vm273_vm1, %vm3030_vm7 }
 0x156   :  { %v965_v50 = vld [vmem:[%s3634_s19 + $0x10] sm:$0xff] }
 0x157   :  { %2479 = vmatpush3.bf16.msra.mxu0 %v2478_v11 }
 0x158   :  { %2486 = vmatprep.subr.bf16.mxu0 %v3025_v8 }
 0x221   :  { %v425_v13 = vpop.f32.mrb[0].mxu1 }
 0x222   :  { %v426_v14 = vadd.f32 %v2080_v12, %v425_v13  ;;  %v2240_v15 = vpop.f32.mrb[1].mxu1  ;;  %v874_v13 = vld [vmem:[#allocation24] sm:$0xff] }
 0x224   :  { %v429_v16 = vmax.f32 %v426_v14, 0.0  ;;  %v687_v17 = vsub.f32 0.0, %v426_v14  ;;  %v875_v14 = vld [vmem:[#allocation24 + $0x8] sm:$0xff] }
 0x225   :  { %v343_v21 = vpop.f32.mrb[0].mxu0  ;;  %v2505_v15 = vpack.c.bf16 %v875_v14, %v874_v13 }
 0x226   :  { %v688_v18 = vmul.f32 1.442695, %v687_v17  ;;  %2250 = vmatmul.mubr.msk.f32.vlgmr.msra.gmra.mrb[2].mxu0 %vm434_vm4, %v429_v16  ;;  %v2235_v22 = vpop.f32.mrb[1].mxu0  ;;  %v344_v34 = vadd.f32 %v2077_v33, %v343_v21  ;;  %v876_v16 = vld [vmem:[#allocation24 + $0x10] sm:$0xff]  ;;  %v877_v17 = vld [vmem:[#allocation24 + $0x18] sm:$0xff] }
 0x227   :  { %2271 = vmatprep.mubr.msk.f32.mxu0 %vm3024_vm0, %v3023_v0  ;;  %2488 = vmatpush3.bf16.msra.mxu0 %v2487_v32  ;;  %v958_v32 = vld [vmem:[%s3633_s18] sm:$0xff]  ;;  %v959_v33 = vld [vmem:[%s3633_s18 + $0x8] sm:$0xff] }
 0x228   :  { %2636 = vpow2.f32 %v688_v18  ;;  %2489 = vmatprep.subr.bf16.mxu0 %v3025_v8  ;;  %v2508_v18 = vpack.c.bf16 %v877_v17, %v876_v16  ;;  %v969_v17 = vld [vmem:[%s3670_s14] sm:$0xff] }
 0x22b   :  { %2491 = vmatpush3.bf16.msra.mxu0 %v2490_v43 }
 0x22c   :  { %2498 = vmatprep.subr.bf16.mxu0 %v3025_v8 }
 0x232   :  { %v2637_v19 = vpop.eup %2636 }
 0x233   :  { %v690_v20 = vadd.f32 1.0, %v2637_v19  ;;  %v2090_v19 = vld [vmem:[#allocation22] ss:$0 sm:$0xff] }
 0x235   :  { %2638 = vrcp.f32 %v690_v20 }
 0x23f   :  { %v2639_v23 = vpop.eup %2638 }
 0x240   :  { %694 = vrot.lane.b32.xlu0 %v2639_v23, %s3026_s27 }
 0x244   :  { %869 = vrot.lane.b32.xlu0 %v2639_v23, %s3027_s15 }
 0x2b2   :  { %v695_v62 = vpop.permute.xlu0 %694 }
 0x2b6   :  { %v870_v23 = vpop.permute.xlu0 %869 }
 0x2f9   :  { %v504_v35 = vpop.f32.mrb[2].mxu0 }
 0x2fa   :  { %v508_v37 = vadd.f32 %v504_v35, %v344_v34  ;;  %v2251_v38 = vpop.f32.mrb[3].mxu0  ;;  %v2511_v34 = vpack.c.bf16 %v959_v33, %v958_v32  ;;  %v960_v35 = vld [vmem:[%s3633_s18 + $0x10] sm:$0xff] }
 0x2fb   :  { %v962_v38 = vld [vmem:[%s3633_s18 + $0x20] sm:$0xff] }
 0x2fc   :  { %v516_v39 = vadd.f32 %v2083_v36, %v508_v37  ;;  %v961_v36 = vld [vmem:[%s3633_s18 + $0x18] sm:$0xff]  ;;  %s3028_s18 = smov 88  }
 0x2fd   :  { %v2514_v37 = vpack.c.bf16 %v961_v36, %v960_v35 }
 0x2fe   :  { %v527_v40 = vmax.f32 %v516_v39, 0.0 }
 0x300   :  { %2261 = vmatmul.mubr.msk.f32.vlgmr.msra.gmra.mrb[2].mxu1 %vm434_vm4, %v527_v40 }
 0x301   :  { %2282 = vmatprep.mubr.msk.f32.mxu1 %vm3024_vm0, %v3023_v0  ;;  %2494 = vmatpush3.bf16.msra.mxu1 %v2493_v51  ;;  %v966_v51 = vld [vmem:[%s3634_s19 + $0x18] sm:$0xff] }
 0x302   :  { %2495 = vmatprep.subr.bf16.mxu1 %v3025_v8  ;;  %v2520_v52 = vpack.c.bf16 %v966_v51, %v965_v50 }
 0x305   :  { %2497 = vmatpush3.bf16.msra.mxu1 %v2496_v54  ;;  %v968_v54 = vld [vmem:[%s3635_s20] sm:$0xf] }
 0x306   :  { %2504 = vmatprep.subr.bf16.mxu1 %v3025_v8 }
 0x3d3   :  { %v603_v45 = vpop.f32.mrb[2].mxu1 }
 0x3d4   :  { %v604_v46 = vadd.f32 %v2084_v44, %v603_v45  ;;  %v2262_v47 = vpop.f32.mrb[3].mxu1 }
 0x3d5   :  { %v963_v47 = vld [vmem:[%s3634_s19] sm:$0xff] }
 0x3d6   :  { %v607_v48 = vmax.f32 %v604_v46, 0.0 }
 0x3d8   :  { %2272 = vmatmul.mubr.msk.f32.vlgmr.msra.gmra.mrb[4].mxu0 %vm434_vm4, %v607_v48  ;;  %v964_v48 = vld [vmem:[%s3634_s19 + $0x8] sm:$0xff]  ;;  %s3029_s19 = smov 40  }
 0x3d9   :  { %2293 = vmatprep.mubr.msk.f32.mxu0 %vm3024_vm0, %v3023_v0  ;;  %2500 = vmatpush3.bf16.msra.mxu0 %v2499_v57  ;;  %v2517_v49 = vpack.c.bf16 %v964_v48, %v963_v47 }
 0x3da   :  { %2501 = vmatprep.subr.bf16.mxu0 %v3025_v8 }
 0x3dd   :  { %2503 = vmatpush3.bf16.msra.mxu0 %v2502_v6 }
 0x3de   :  { %2510 = vmatprep.subr.bf16.mxu0 %v3025_v8 }
 0x4ab   :  { %v683_v59 = vpop.f32.mrb[4].mxu0 }
 0x4ac   :  { %v684_v60 = vadd.f32 %v2086_v58, %v683_v59  ;;  %v2273_v61 = vpop.f32.mrb[5].mxu0 }
 0x4ae   :  { %v697_v63 = vmul.f32 %v695_v62, %v684_v60 }
 0x4b0   :  { %v698_v1 = vadd.f32 %v697_v63, %v516_v39 }
 0x4b2   :  { %v709_v2 = vmax.f32 %v698_v1, 0.0 }
 0x4b4   :  { %2283 = vmatmul.mubr.msk.f32.vlgmr.msra.gmra.mrb[4].mxu1 %vm434_vm4, %v709_v2 }
 0x4b5   :  { %2304 = vmatprep.mubr.msk.f32.mxu1 %vm3024_vm0, %v3023_v0  ;;  %2506 = vmatpush3.bf16.msra.mxu1 %v2505_v15 }
 0x4b6   :  { %2507 = vmatprep.subr.bf16.mxu1 %v3025_v8 }
 0x4b9   :  { %2509 = vmatpush3.bf16.msra.mxu1 %v2508_v18  ;;  %v970_v18 = vld [vmem:[%s3670_s14 + $0x8] sm:$0xff] }
 0x4ba   :  { %2516 = vmatprep.subr.bf16.mxu1 %v3025_v8 }
 0x587   :  { %v785_v9 = vpop.f32.mrb[4].mxu1 }
 0x588   :  { %v786_v10 = vadd.f32 %v2088_v7, %v785_v9  ;;  %v2284_v11 = vpop.f32.mrb[5].mxu1  ;;  %v1058_v7 = vlaneseq }
 0x589   :  { %v975_v11 = vld [vmem:[%s3637_s22] sm:$0x7] }
 0x58a   :  { %v789_v12 = vmax.f32 %v786_v10, 0.0  ;;  %v1059_v9 = vshrl.u32 %v1058_v7, 7  ;;  %v1135_v13 = vsub.f32 1.0, %v975_v11 }
 0x58c   :  { %2294 = vmatmul.mubr.msk.f32.vlgmr.msra.gmra.mrb[6].mxu0 %vm434_vm4, %v789_v12  ;;  %v1060_v10 = vsub.s32 0, %v1059_v9  ;;  %v1138_v14 = vsub.s32 1, %v1059_v9 }
 0x58d   :  { %2317 = vmatprep.mubr.msk.f32.mxu0 %vm3024_vm0, %v3023_v0  ;;  %2512 = vmatpush3.bf16.msra.mxu0 %v2511_v34 }
 0x58e   :  { %2513 = vmatprep.subr.bf16.mxu0 %v3025_v8  ;;  %v1061_v12 = vrot.slane %v975_v11, %v1060_v10  ;;  %v1139_v16 = vrot.slane %v1135_v13, %v1138_v14 }
 0x591   :  { %2515 = vmatpush3.bf16.msra.mxu0 %v2514_v37 }
 0x592   :  { %2315 = vmatprep.subr.mxu0 %v3023_v0 }
 0x595   :  { %2316 = vmatpush3.msra.mxu0 %v962_v38 }
 0x596   :  { %2522 = vmatprep.subr.bf16.mxu0 %v3025_v8 }
 0x65f   :  { %v865_v20 = vpop.f32.mrb[6].mxu0 }
 0x660   :  { %v866_v21 = vadd.f32 %v2090_v19, %v865_v20  ;;  %v2295_v22 = vpop.f32.mrb[7].mxu0  ;;  %v1144_v20 = vrot.slane %v975_v11, %v1138_v14 }
 0x661   :  { %v3498_v22 = vpack.c.bf16 %v970_v18, %v969_v17 }
 0x662   :  { %v872_v24 = vmul.f32 %v870_v23, %v866_v21  ;;  %v1394_v21 = vmul.f32 1e-06, %v975_v11  ;;  %v971_v23 = vld [vmem:[%s3670_s14 + $0x10] sm:$0xff] }
 0x664   :  { %v873_v25 = vadd.f32 %v872_v24, %v698_v1  ;;  %v972_v24 = vld [vmem:[%s3670_s14 + $0x18] sm:$0xff] }
 0x666   :  { %2305 = vmatmul.mubr.msk.f32.vlgmr.msra.gmra.mrb[6].mxu1 %vm434_vm4, %v873_v25 }
 0x667   :  { %2330 = vmatprep.mubr.msk.f32.mxu1 %vm3024_vm0, %v3023_v0  ;;  %2518 = vmatpush3.bf16.msra.mxu1 %v2517_v49 }
 0x668   :  { %2519 = vmatprep.subr.bf16.mxu1 %v3025_v8 }
 0x66b   :  { %2521 = vmatpush3.bf16.msra.mxu1 %v2520_v52 }
 0x66c   :  { %2328 = vmatprep.subr.mxu1 %v3023_v0 }
 0x66f   :  { %2329 = vmatpush3.msra.mxu1 %v967_v53 }
 0x670   :  { %2528 = vmatprep.subr.bf16.mxu1 %v3025_v8 }
 0x739   :  { %v954_v27 = vpop.f32.mrb[6].mxu1 }
 0x73a   :  { %v3418_v28 = vadd.f32 %v2092_v26, %v954_v27  ;;  %v2306_v29 = vpop.f32.mrb[7].mxu1  ;;  %v1398_v27 = vrot.slane %v1394_v21, %v1138_v14 }
 0x73b   :  { %v3508_v29 = vpack.c.bf16 %v972_v24, %v971_v23 }
 0x73c   :  { %v977_v30 = vsel %vm976_vm5, %v3418_v28, -inf  ;;  %v1147_v31 = vsel %vm1146_vm6, %v3418_v28, -inf }
 0x73d   :  { %978 = vmax.xlane.f32.xlu1 %v977_v30  ;;  %v973_v30 = vld [vmem:[%s3670_s14 + $0x20] sm:$0xff] }
 0x741   :  { %1148 = vmax.xlane.f32.xlu1 %v1147_v31  ;;  %v974_v31 = vld [vmem:[%s3670_s14 + $0x28] sm:$0xf] }
 0x742   :  { %v3520_v33 = vpack.c.bf16 %v974_v31, %v973_v30 }
 0x7ca   :  { %v979_v39 = vpop.xlane.xlu1 %978 }
 0x7cb   :  { %v980_v40 = vsub.f32 %v3418_v28, %v979_v39 }
 0x7cd   :  { %v981_v41 = vmul.f32 1.442695, %v980_v40 }
 0x7ce   :  { %v1149_v42 = vpop.xlane.xlu1 %1148 }
 0x7cf   :  { %2640 = vpow2.f32 %v981_v41  ;;  %v1150_v43 = vsub.f32 %v3418_v28, %v1149_v42  ;;  %v1556_v42 = vsub.s32 2, %v1059_v9 }
 0x7d1   :  { %v1151_v44 = vmul.f32 1.442695, %v1150_v43 }
 0x7d3   :  { %2642 = vpow2.f32 %v1151_v44  ;;  %v1557_v44 = vrot.slane %v975_v11, %v1556_v42 }
 0x7d9   :  { %v2641_v45 = vpop.eup %2640 }
 0x7da   :  { %2318 = vmatmul.mubr.msk.f32.vlgmr.msra.gmra.mrb[8].mxu0 %vm976_vm5, %v2641_v45 }
 0x7db   :  { %2524 = vmatpush3.bf16.msra.mxu0 %v2511_v34  ;;  %2343 = vmatprep.mubr.msk.f32.mxu0 %vm3024_vm0, %v3023_v0 }
 0x7dc   :  { %2525 = vmatprep.subr.bf16.mxu0 %v3025_v8 }
 0x7dd   :  { %v2643_v46 = vpop.eup %2642 }
 0x7de   :  { %1154 = vrot.lane.b32.xlu0 %v2643_v46, %s3028_s18 }
 0x7df   :  { %2527 = vmatpush3.bf16.msra.mxu0 %v2514_v37 }
 0x7e0   :  { %2341 = vmatprep.subr.mxu0 %v3023_v0 }
 0x7e3   :  { %2342 = vmatpush3.msra.mxu0 %v962_v38 }
 0x7e4   :  { %2359 = vmatprep.subr.mxu0 %v3023_v0 }
 0x850   :  { %v1155_v55 = vpop.permute.xlu0 %1154 }
 0x851   :  { %2344 = vmatmul.mubr.msk.f32.vlgmr.msra.gmra.mrb[10].mxu0 %vm976_vm5, %v1155_v55 }
 0x852   :  { %2360 = vmatpush3.msk.msra.mxu0 %vm273_vm1, %v968_v54  ;;  %2361 = vmatprep.mubr.msk.f32.mxu0 %vm3024_vm0, %v3023_v0 }
 0x853   :  { %2379 = vmatprep.subr.mxu0 %v3023_v0 }
 0x855   :  { %2362 = vmatmul.mubr.msk.f32.vlgmr.msra.gmra.mrb[12].mxu0 %vm269_vm3, %v3363_v4 }
 0x856   :  { %2380 = vmatpush3.msk.msra.mxu0 %vm273_vm1, %v968_v54  ;;  %2381 = vmatprep.mubr.msk.f32.mxu0 %vm3024_vm0, %v3023_v0 }
 0x857   :  { %2544 = vmatprep.subr.bf16.mxu0 %v3025_v8 }
 0x8ad   :  { %v1052_v56 = vpop.f32.mrb[8].mxu0 }
 0x8ae   :  { %2644 = vrcp.f32 %v1052_v56  ;;  %v2319_v57 = vpop.f32.mrb[9].mxu0 }
 0x8af   :  { %v1312_v57 = vand.u32 2147483647, %v3418_v28 }
 0x8b8   :  { %v2645_v58 = vpop.eup %2644 }
 0x8b9   :  { %v1057_v59 = vmul.f32 %v2645_v58, %v2641_v45  ;;  %v1313_v58 = vsub.f32 0.0, %v1312_v57 }
 0x8bb   :  { %2331 = vmatmul.mubr.msk.f32.vlgmr.msra.gmra.mrb[8].mxu1 %vm976_vm5, %v1057_v59  ;;  %v1314_v59 = vmul.f32 1.442695, %v1313_v58 }
 0x8bc   :  { %2530 = vmatpush3.bf16.msra.mxu1 %v2517_v49  ;;  %2356 = vmatprep.mubr.msk.f32.mxu1 %vm3024_vm0, %v3023_v0 }
 0x8bd   :  { %2531 = vmatprep.subr.bf16.mxu1 %v3025_v8 }
 0x8c0   :  { %2533 = vmatpush3.bf16.msra.mxu1 %v2520_v52 }
 0x8c1   :  { %2354 = vmatprep.subr.mxu1 %v3023_v0 }
 0x8c4   :  { %2355 = vmatpush3.msra.mxu1 %v967_v53 }
 0x8c5   :  { %2534 = vmatprep.subr.bf16.mxu1 %v3025_v8 }
 0x924   :  { %v1224_v60 = vpop.f32.mrb[10].mxu0 }
 0x925   :  { %2646 = vrcp.f32 %v1224_v60  ;;  %v2345_v61 = vpop.f32.mrb[11].mxu0 }
 0x926   :  { %2648 = vpow2.f32 %v1314_v59 }
 0x928   :  { %v1390_v62 = vpop.f32.mrb[12].mxu0 }
 0x929   :  { %v2363_v63 = vpop.f32.mrb[13].mxu0 }
 0x92f   :  { %v2647_v1 = vpop.eup %2646 }
 0x930   :  { %1230 = vrot.lane.b32.xlu1 %v2647_v1, %s3029_s19  ;;  %v2649_v60 = vpop.eup %2648  ;;  %v1311_v1 = vmax.f32 %v3418_v28, 0.0 }
 0x931   :  { %v1316_v61 = vadd.f32 1.0, %v2649_v60 }
 0x933   :  { %2650 = vlog2.f32 %v1316_v61 }
 0x98e   :  { %v1131_v2 = vpop.f32.mrb[8].mxu1 }
 0x98f   :  { %v2332_v3 = vpop.f32.mrb[9].mxu1  ;;  %v1132_v15 = vadd.f32 %v1131_v2, %v1061_v12 }
 0x991   :  { %v1140_v19 = vmul.f32 %v1139_v16, %v1132_v15 }
 0x993   :  { %v1145_v26 = vadd.f32 %v1144_v20, %v1140_v19 }
 0x995   :  { %v1399_v32 = vadd.f32 %v1398_v27, %v1145_v26 }
 0x997   :  { %vm1400_vm9 = vcmp.ge.f32.partialorder %v1390_v62, %v1399_v32  ;;  %v2651_v62 = vpop.eup %2650 }
 0x998   :  { %v2100_v35 = vsel %vm1400_vm9, 1.0, %v3023_v0  ;;  %v1318_v63 = vmul.f32 0.6931472, %v2651_v62 }
 0x99a   :  { %v1319_v2 = vadd.f32 %v1318_v63, %v1311_v1 }
 0x9a2   :  { %v1231_v5 = vpop.permute.xlu1 %1230 }
 0x9a3   :  { %v1233_v6 = vmul.f32 %v2643_v46, %v1231_v5  ;;  %v1320_v5 = vadd.f32 0.001, %v1319_v2 }
 0x9a5   :  { %1235 = vrot.lane.b32.xlu0 %v1233_v6, %s3028_s18 }
 0xa17   :  { %v1236_v25 = vpop.permute.xlu0 %1235 }
 0xa18   :  { %2357 = vmatmul.mubr.msk.f32.vlgmr.msra.gmra.mrb[10].mxu1 %vm976_vm5, %v1236_v25 }
 0xa19   :  { %2536 = vmatpush3.bf16.msra.mxu1 %v3498_v22  ;;  %2376 = vmatprep.mubr.msk.f32.mxu1 %vm3024_vm0, %v3023_v0 }
 0xa1a   :  { %2537 = vmatprep.subr.bf16.mxu1 %v3025_v8 }
 0xa1d   :  { %2539 = vmatpush3.bf16.msra.mxu1 %v3508_v29 }
 0xa1e   :  { %2540 = vmatprep.subr.bf16.mxu1 %v3025_v8 }
 0xa21   :  { %2543 = vmatpush3.bf16.msk.msra.mxu1 %vm3523_vm8, %v3520_v33 }
 0xa22   :  { %2554 = vmatprep.subr.bf16.mxu1 %v3025_v8 }
 0xa24   :  { %2377 = vmatmul.mubr.msk.f32.vlgmr.msra.gmra.mrb[12].mxu1 %vm1403_vm10, %v2100_v35 }
 0xa25   :  { %2556 = vmatpush3.bf16.msra.mxu1 %v3498_v22  ;;  %2411 = vmatprep.mubr.msk.f32.mxu1 %vm3024_vm0, %v3023_v0 }
 0xa26   :  { %2557 = vmatprep.subr.bf16.mxu1 %v3025_v8 }
 0xa29   :  { %2559 = vmatpush3.bf16.msra.mxu1 %v3508_v29 }
 0xa2a   :  { %2560 = vmatprep.subr.bf16.mxu1 %v3025_v8 }
 0xa2d   :  { %2563 = vmatpush3.bf16.msk.msra.mxu1 %vm3523_vm8, %v3520_v33 }
 0xa2e   :  { %2574 = vmatprep.subr.bf16.mxu1 %v3025_v8 }
 0xaeb   :  { %v1305_v36 = vpop.f32.mrb[10].mxu1 }
 0xaec   :  { %v2358_v37 = vpop.f32.mrb[11].mxu1  ;;  %v1306_v41 = vadd.f32 %v1305_v36, %v1061_v12 }
 0xaee   :  { %v1309_v43 = vmul.f32 %v1306_v41, %v1139_v16 }
 0xaf0   :  { %v1310_v46 = vadd.f32 %v1309_v43, %v1144_v20 }
 0xaf7   :  { %v1476_v38 = vpop.f32.mrb[12].mxu1 }
 0xaf8   :  { %v2103_v39 = vadd.f32 -1.0, %v1476_v38  ;;  %v2378_v40 = vpop.f32.mrb[13].mxu1 }
 0xafa   :  { %2382 = vmatmul.mubr.msk.f32.vlgmr.msra.gmra.mrb[14].mxu0 %vm269_vm3, %v2103_v39 }
 0xafb   :  { %2546 = vmatpush3.bf16.msra.mxu0 %v3498_v22  ;;  %2396 = vmatprep.mubr.msk.f32.mxu0 %vm3024_vm0, %v3023_v0 }
 0xafc   :  { %2547 = vmatprep.subr.bf16.mxu0 %v3025_v8 }
 0xaff   :  { %2549 = vmatpush3.bf16.msra.mxu0 %v3508_v29 }
 0xb00   :  { %2550 = vmatprep.subr.bf16.mxu0 %v3025_v8 }
 0xb03   :  { %2553 = vmatpush3.bf16.msk.msra.mxu0 %vm3523_vm8, %v3520_v33 }
 0xb04   :  { %2564 = vmatprep.subr.bf16.mxu0 %v3025_v8 }
 0xbcd   :  { %v1550_v45 = vpop.f32.mrb[14].mxu0 }
 0xbce   :  { %vm1558_vm11 = vcmp.eq.f32.partialorder %v1557_v44, %v1550_v45  ;;  %v1561_v47 = vadd.f32 1.0, %v1550_v45  ;;  %v2383_v48 = vpop.f32.mrb[15].mxu0 }
 0xbcf   :  { %v2106_v49 = vsel %vm1558_vm11, 1.0, %v3023_v0 }
 0xbd0   :  { %vm1562_vm12 = vcmp.eq.f32.partialorder %v1557_v44, %v1561_v47  ;;  %v1566_v50 = vmul.f32 %v2106_v49, %v1145_v26  ;;  %v3556_v51 = vmul.f32 %v2106_v49, %v1310_v46 }
 0xbd1   :  { %v2107_v52 = vsel %vm1562_vm12, 1.0, %v3023_v0 }
 0xbd2   :  { %v1565_v53 = vsub.f32 %v2107_v52, %v2106_v49  ;;  %2397 = vmatmul.mubr.msk.f32.vlgmr.msra.gmra.mrb[16].mxu0 %vm1403_vm10, %v1566_v50  ;;  %v2631_v54 = vpack.i.bf16 %v2107_v52, %v2106_v49 }
 0xbd3   :  { %2566 = vmatpush3.bf16.msra.mxu0 %v3498_v22  ;;  %2426 = vmatprep.mubr.msk.f32.mxu0 %vm3024_vm0, %v3023_v0 }
 0xbd4   :  { %v1640_v55 = vmul.f32 %v1565_v53, %v1145_v26  ;;  %v1715_v56 = vmul.f32 %v1565_v53, %v1310_v46  ;;  %2632 = vrot.lane.b32.xlu0 %v2631_v54, %s3031_s8  ;;  %2567 = vmatprep.subr.bf16.mxu0 %v3025_v8 }
 0xbd6   :  { %2412 = vmatmul.mubr.msk.f32.vlgmr.msra.gmra.mrb[14].mxu1 %vm1403_vm10, %v1640_v55 }
 0xbd7   :  { %2569 = vmatpush3.bf16.msra.mxu0 %v3508_v29  ;;  %2576 = vmatpush3.bf16.msra.mxu1 %v3498_v22 }
 0xbd8   :  { %2570 = vmatprep.subr.bf16.mxu0 %v3025_v8  ;;  %2577 = vmatprep.subr.bf16.mxu1 %v3025_v8 }
 0xbd9   :  { %2441 = vmatprep.mubr.msk.f32.mxu1 %vm3024_vm0, %v3023_v0 }
 0xbdb   :  { %2573 = vmatpush3.bf16.msk.msra.mxu0 %vm3523_vm8, %v3520_v33  ;;  %2579 = vmatpush3.bf16.msra.mxu1 %v3508_v29 }
 0xbdc   :  { %2584 = vmatprep.subr.bf16.mxu0 %v3025_v8  ;;  %2580 = vmatprep.subr.bf16.mxu1 %v3025_v8 }
 0xbde   :  { %2427 = vmatmul.mubr.msk.f32.vlgmr.msra.gmra.mrb[18].mxu0 %vm1403_vm10, %v1715_v56 }
 0xbdf   :  { %2586 = vmatpush3.bf16.msra.mxu0 %v3498_v22  ;;  %2583 = vmatpush3.bf16.msk.msra.mxu1 %vm3523_vm8, %v3520_v33 }
 0xbe0   :  { %2587 = vmatprep.subr.bf16.mxu0 %v3025_v8  ;;  %2594 = vmatprep.subr.bf16.mxu1 %v3025_v8 }
 0xbe1   :  { %2456 = vmatprep.mubr.msk.f32.mxu0 %vm3024_vm0, %v3023_v0 }
 0xbe3   :  { %2589 = vmatpush3.bf16.msra.mxu0 %v3508_v29 }
 0xbe4   :  { %2590 = vmatprep.subr.bf16.mxu0 %v3025_v8 }
 0xbe7   :  { %2593 = vmatpush3.bf16.msk.msra.mxu0 %vm3523_vm8, %v3520_v33 }
 0xc46   :  { %v2633_v3 = vpop.permute.xlu0 %2632 }
 0xc47   :  { %v2634_v6 = vunpack.i.l.bf16 %v2633_v3  ;;  %v2635_v7 = vunpack.i.h.bf16 %v2633_v3 }
 0xc49   :  { %v1793_v9 = vmul.f32 %v2634_v6, %v1320_v5  ;;  %v1873_v10 = vmul.f32 %v2635_v7, %v1320_v5 }
 0xc4b   :  { %1795 = vrot.lane.b32.xlu0 %v1793_v9, %s3032_s26 }
 0xc4f   :  { %1875 = vrot.lane.b32.xlu0 %v1873_v10, %s3032_s26 }
 0xca5   :  { %v1636_v11 = vpop.f32.mrb[16].mxu0 }
 0xca6   :  { %v2398_v12 = vpop.f32.mrb[17].mxu0  ;;  %v1951_v17 = vsub.f32 %v3363_v4, %v1636_v11 }
 0xca9   :  { %v1710_v13 = vpop.f32.mrb[14].mxu1 }
 0xcaa   :  { %2652 = vrcp.f32 %v1710_v13  ;;  %v2413_v14 = vpop.f32.mrb[15].mxu1 }
 0xcb1   :  { %v1785_v15 = vpop.f32.mrb[18].mxu0 }
 0xcb2   :  { %v2428_v16 = vpop.f32.mrb[19].mxu0 }
 0xcb4   :  { %v2653_v28 = vpop.eup %2652 }
 0xcb5   :  { %v1952_v18 = vmul.f32 %v2653_v28, %v1951_v17  ;;  %v1950_v19 = vmul.f32 %v2653_v28, %v1785_v15 }
 0xcb7   :  { %v1953_v20 = vsub.f32 1.0, %v1952_v18  ;;  %v1955_v21 = vmul.f32 %v1952_v18, %v1950_v19  ;;  %v1961_v25 = vmul.f32 2.0, %v1950_v19  ;;  %v2040_v43 = vmul.f32 %v1950_v19, %v1950_v19 }
 0xcb9   :  { %v1954_v23 = vmul.f32 %v1953_v20, %v1952_v18  ;;  %v1956_v24 = vmul.f32 %v1955_v21, %v1952_v18 }
 0xcbb   :  { %v2043_v26 = vmul.f32 %v1961_v25, %v1954_v23 }
 0xcbd   :  { %v1796_v27 = vpop.permute.xlu0 %1795 }
 0xcbe   :  { %2442 = vmatmul.mubr.msk.f32.vlgmr.msra.gmra.mrb[16].mxu1 %vm1403_vm10, %v1796_v27 }
 0xcbf   :  { %2596 = vmatpush3.bf16.msra.mxu1 %v3498_v22  ;;  %2471 = vmatprep.mubr.msk.f32.mxu1 %vm3024_vm0, %v3023_v0 }
 0xcc0   :  { %2597 = vmatprep.subr.bf16.mxu1 %v3025_v8 }
 0xcc1   :  { %v1876_v4 = vpop.permute.xlu0 %1875 }
 0xcc2   :  { %2457 = vmatmul.mubr.msk.f32.vlgmr.msra.gmra.mrb[20].mxu0 %vm1403_vm10, %v1876_v4 }
 0xcc3   :  { %2599 = vmatpush3.bf16.msra.mxu1 %v3508_v29 }
 0xcc4   :  { %2600 = vmatprep.subr.bf16.mxu1 %v3025_v8 }
 0xcc7   :  { %2603 = vmatpush3.bf16.msk.msra.mxu1 %vm3523_vm8, %v3520_v33 }
 0xcca   :  { %2472 = vmatmul.mubr.msk.f32.vlgmr.msra.gmra.mrb[18].mxu1 %vm1403_vm10, %v3556_v51 }
 0xd91   :  { %v1865_v22 = vpop.f32.mrb[16].mxu1 }
 0xd92   :  { %v1957_v30 = vmul.f32 %v1954_v23, %v1865_v22  ;;  %v2045_v31 = vmul.f32 %v1953_v20, %v1865_v22  ;;  %v2443_v0 = vpop.f32.mrb[17].mxu1 }
 0xd94   :  { %v1958_v32 = vadd.f32 %v1957_v30, %v1956_v24  ;;  %v2046_v35 = vmul.f32 %v2045_v31, %v1953_v20 }
 0xd95   :  { %v1945_v36 = vpop.f32.mrb[20].mxu0 }
 0xd96   :  { %v1960_v37 = vadd.f32 %v1945_v36, %v1865_v22  ;;  %v2041_v38 = vmul.f32 %v1952_v18, %v1945_v36  ;;  %v2458_v39 = vpop.f32.mrb[21].mxu0  ;;  %v1959_v29 = vmul.f32 %v1958_v32, %v1785_v15 }
 0xd98   :  { %v1962_v40 = vsub.f32 %v1960_v37, %v1961_v25  ;;  %v2042_v8 = vmul.f32 %v2041_v38, %v1952_v18 }
 0xd9a   :  { %v1963_v41 = vmul.f32 %v1962_v40, %v1954_v23  ;;  %v2044_v42 = vadd.f32 %v2043_v26, %v2042_v8 }
 0xd9c   :  { %v1964_v34 = vadd.f32 %v1963_v41, %v1950_v19  ;;  %v2047_v33 = vadd.f32 %v2046_v35, %v2044_v42 }
 0xd9d   :  { %v2036_v44 = vpop.f32.mrb[18].mxu1 }
 0xd9e   :  { %2654 = vrcp.f32 %v1964_v34  ;;  %v2473_v45 = vpop.f32.mrb[19].mxu1  ;;  %v2048_v46 = vmul.f32 %v2047_v33, %v2040_v43 }
 0xd9f   :  { %2656 = vlog2.f32 %v1964_v34 }
 0xda0   :  { %2658 = vlog2.f32 %v2048_v46 }
 0xda8   :  { %v2655_v47 = vpop.eup %2654 }
 0xda9   :  { %v2657_v48 = vpop.eup %2656  ;;  %v1966_v49 = vmul.f32 %v2655_v47, %v1959_v29 }
 0xdaa   :  { %v2659_v50 = vpop.eup %2658  ;;  %v2052_v51 = vmul.f32 0.6931472, %v2657_v48 }
 0xdab   :  { %v2037_v52 = vadd.f32 %v2036_v44, %v1966_v49  ;;  %v2050_v53 = vmul.f32 0.6931472, %v2659_v50 }
 0xdac   :  { %v2053_v54 = vmul.f32 2.0, %v2052_v51 }
 0xdad   :  { %2055 = vst.msk [vmem:[%s3673_s3] sm:$0xff] %vm269_vm3, %v2037_v52 }
 0xdae   :  { %v2054_v55 = vsub.f32 %v2050_v53, %v2053_v54 }
 0xdb0   :  { %v2056_v56 = vsel %vm269_vm3, %v2054_v55, 0.0 }
 0xdb1   :  { %2057 = vadd.xlane.f32.xlu1 %v2056_v56 }
 0xe3e   :  { %v2058_v57 = vpop.xlane.xlu1 %2057 }
 0xe3f   :  { %2060 = vst.msk [vmem:[%s3674_s6] sm:$0xff] %vm2059_vm13, %v2058_v57 }
 0xe40   :  { %2069 = vsyncpa [#allocation3], 1 }
 0xe41   :  { %2070 = vsyncpa [#allocation5], 1 }
 0xe42   :  { %2071 = vsyncpa [#allocation8], 1 }
 0xe43   :  { %2072 = vsyncpa [#allocation11], 1 }
 0xe44   :  { %2073 = vsyncpa [#allocation14], 1 }
 0xe45   :  { %2074 = vsyncpa [#allocation17], 1 }
 0xe46   :  { %2075 = vsyncpa [#allocation20], 1 }
 0xe47   :  { %2076 = vsyncpa [#allocation23], 1 }

</bundles_post_ra>
